<compile_context>
chip_gen: v7x
topology: tpu7x:2x2x1
jax: 0.10.0
libtpu: 0.0.40
codegen_flags: <defaults>
</compile_context>

<pallas_src>
import functools

import jax
import jax.numpy as jnp
from jax import lax
from jax.experimental import pallas as pl
from jax.experimental.pallas import tpu as pltpu


# ----------------------------------------------------------------------------
# Pallas kernel
# ----------------------------------------------------------------------------
def _encoder_kernel(
    xf_ref,    # (S*B, F)   time-major flattened input
    hc0_ref,   # (B, 2H)    [h0 | c0]
    w_ref,     # (F + 7H + 4, 4H) packed parameter slab (see wrapper)
    out_ref,   # (n_out*B + B, 4H) fused output: mu rows then [h_n | c_n] rows
    *, S, B, F, H, L, n_out,
):
    f32 = jnp.float32

    # ---- static row offsets inside the packed parameter slab ---------------
    r_wih = F                 # wih^T            (H, 4H)
    r_whh = r_wih + H         # whh gate blocks  (4H, H)   order i, f, g, o
    r_w2 = r_whh + 4 * H      # w2^T             (H, H)
    r_wm = r_w2 + H           # wm^T             (H, L)
    r_b = r_wm + H            # 4 bias rows: b1, (bih+bhh), b2, bm

    w1_t = w_ref[0:F, 0:H]                                   # (F, H)
    wih_t = w_ref[r_wih:r_whh, 0:4 * H]                      # (H, 4H)
    whh_gate = [w_ref[r_whh + k * H:r_whh + (k + 1) * H, 0:H]
                for k in range(4)]                           # 4 x (H, H)
    w2_t = w_ref[r_w2:r_wm, 0:H]                             # (H, H)
    wm_t = w_ref[r_wm:r_b, 0:L]                              # (H, L)
    b1 = w_ref[r_b + 0:r_b + 1, 0:H]                         # (1, H)
    blstm = w_ref[r_b + 1:r_b + 2, 0:4 * H]                  # (1, 4H)
    b2 = w_ref[r_b + 2:r_b + 3, 0:H]                         # (1, H)
    bm = w_ref[r_b + 3:r_b + 4, 0:L]                         # (1, L)

    # ---- fc1 + relu, dense time-major layout: (S*B, H) ---------------------
    h1 = jnp.maximum(
        jnp.dot(xf_ref[...], w1_t, preferred_element_type=f32) + b1, 0.0)

    # ---- hoisted LSTM input projection + folded bias: (S*B, 4H) ------------
    gx = jnp.dot(h1, wih_t, preferred_element_type=f32) + blstm
    # One-time gate-column split (off the serial recurrence path) so the
    # per-step slices below are contiguous sublane ranges with no lane rotates.
    gx_gate = [gx[:, k * H:(k + 1) * H] for k in range(4)]   # 4 x (S*B, H)

    h = hc0_ref[:, 0:H]
    c = hc0_ref[:, H:2 * H]
    h_prev = h

    def sigmoid_exact(z):
        # sigma(z) == 0.5 * (1 + tanh(z / 2)) — exact, single EUP tanh,
        # avoids the precise divide jax.nn.sigmoid would put on the serial path.
        return 0.5 * (1.0 + jnp.tanh(0.5 * z))

    # ---- LSTM recurrence, fully unrolled (S is static and small) -----------
    # Per step: 4 small pipelined MXU pushes (one per gate block, each result
    # landing at lanes 0..H-1), EUP tanh, VPU combine. Only (h_prev, h, c)
    # stay live; no per-step VMEM stores.
    for t in range(S):
        rows = slice(t * B, (t + 1) * B)
        gi = gx_gate[0][rows] + jnp.dot(h, whh_gate[0], preferred_element_type=f32)
        gf = gx_gate[1][rows] + jnp.dot(h, whh_gate[1], preferred_element_type=f32)
        gg = gx_gate[2][rows] + jnp.dot(h, whh_gate[2], preferred_element_type=f32)
        go = gx_gate[3][rows] + jnp.dot(h, whh_gate[3], preferred_element_type=f32)
        i_g = sigmoid_exact(gi)
        f_g = sigmoid_exact(gf)
        g_g = jnp.tanh(gg)
        o_g = sigmoid_exact(go)
        c_new = f_g * c + i_g * g_g
        h_new = o_g * jnp.tanh(c_new)
        h_prev, h, c = h, h_new, c_new

    # ---- tail: fc2 + relu -> mean_linear on the last n_out hidden states ---
    if n_out == 2:
        tail = jnp.concatenate([h_prev, h], axis=0)          # (2B, H): [-2; -1]
    else:
        tail = h                                              # (B, H)
    out2 = jnp.maximum(
        jnp.dot(tail, w2_t, preferred_element_type=f32) + b2, 0.0)
    mu = jnp.dot(out2, wm_t, preferred_element_type=f32) + bm

    # ---- fused output slab (single writeback DMA) ---------------------------
    out_ref[0:n_out * B, 0:L] = mu
    out_ref[n_out * B:n_out * B + B, 0:2 * H] = jnp.concatenate([h, c], axis=1)


# ----------------------------------------------------------------------------
# Wrapper
# ----------------------------------------------------------------------------
def recurrent_latent_encoder_det(x, hidden_in, params):
    """x: (B, S, F) f32.  hidden_in: (h0, c0) each (1, B, H).  Returns
    (mu, (h_n, c_n)) with the same semantics as the PyTorch module."""
    h0, c0 = hidden_in
    B, S, F = x.shape
    H = params["w1"].shape[0]
    L = params["wm"].shape[0]
    n_out = 1 if S == 1 else 2
    f32 = jnp.float32
    W = 4 * H                                # lane width of the packed slabs
    assert L <= W and H <= W

    def pad_lanes(a):
        a = a.astype(f32)
        return jnp.pad(a, ((0, 0), (0, W - a.shape[1])))

    # Pre-transpose weights, fold LSTM biases, split whh into gate blocks, and
    # pack everything into ONE lane-dense slab (free in XLA; 3 input DMAs total).
    w1_t = params["w1"].T                                    # (F, H)
    wih_t = params["wih"].T                                  # (H, 4H) gates i,f,g,o
    whh_t = params["whh"].T                                  # (H, 4H)
    whh_blocks = jnp.concatenate(
        [whh_t[:, k * H:(k + 1) * H] for k in range(4)], axis=0)   # (4H, H)
    w2_t = params["w2"].T                                    # (H, H)
    wm_t = params["wm"].T                                    # (H, L)
    b1 = params["b1"].reshape(1, -1)
    blstm = (params["bih"] + params["bhh"]).reshape(1, -1)
    b2 = params["b2"].reshape(1, -1)
    bm = params["bm"].reshape(1, -1)

    slab = jnp.concatenate(
        [pad_lanes(w1_t), pad_lanes(wih_t), pad_lanes(whh_blocks),
         pad_lanes(w2_t), pad_lanes(wm_t),
         pad_lanes(b1), pad_lanes(blstm), pad_lanes(b2), pad_lanes(bm)],
        axis=0)                                              # (F + 7H + 4, 4H)

    xf = jnp.transpose(x, (1, 0, 2)).reshape(S * B, F).astype(f32)   # time-major
    hc0 = jnp.concatenate([h0[0], c0[0]], axis=1).astype(f32)        # (B, 2H)

    vmem = pl.BlockSpec(memory_space=pltpu.MemorySpace.VMEM)
    out = pl.pallas_call(
        functools.partial(_encoder_kernel, S=S, B=B, F=F, H=H, L=L, n_out=n_out),
        out_shape=jax.ShapeDtypeStruct((n_out * B + B, W), f32),
        in_specs=[vmem, vmem, vmem],
        out_specs=vmem,
    )(xf, hc0, slab)

    mu_flat = out[0:n_out * B, 0:L]                          # [t=-2 rows; t=-1 rows]
    h_n = out[n_out * B:n_out * B + B, 0:H][None]            # (1, B, H)
    c_n = out[n_out * B:n_out * B + B, H:2 * H][None]        # (1, B, H)
    mu = jnp.transpose(mu_flat.reshape(n_out, B, L), (1, 0, 2))   # (B, n_out, L)
    if S == 1:
        mu = mu[:, 0, :]                                     # (B, L) == out[:, -1, :]
    return mu, (h_n, c_n)


# ----------------------------------------------------------------------------
# Pure-JAX reference (mirrors the PyTorch forward) for verification
# ----------------------------------------------------------------------------
def _reference(x, hidden_in, p):
    h0, c0 = hidden_in
    B, S, F = x.shape
    h1 = jax.nn.relu(x @ p["w1"].T + p["b1"])                # (B, S, H)

    def step(carry, xt):
        h, c = carry
        g = xt @ p["wih"].T + p["bih"] + h @ p["whh"].T + p["bhh"]
        i, f, gg, o = jnp.split(g, 4, axis=-1)
        c = jax.nn.sigmoid(f) * c + jax.nn.sigmoid(i) * jnp.tanh(gg)
        h = jax.nn.sigmoid(o) * jnp.tanh(c)
        return (h, c), h

    (hT, cT), hs = lax.scan(step, (h0[0], c0[0]), jnp.transpose(h1, (1, 0, 2)))
    hs = jnp.transpose(hs, (1, 0, 2))                        # (B, S, H)
    out = hs[:, -1, :] if S == 1 else hs[:, -2:, :]
    out2 = jax.nn.relu(out @ p["w2"].T + p["b2"])
    mu = out2 @ p["wm"].T + p["bm"]
    return mu, (hT[None], cT[None])


# ----------------------------------------------------------------------------
# Deterministic parameter construction (shapes per the module __init__)
# ----------------------------------------------------------------------------
def _make_params(key, input_dim, latent_dim, hidden_dim, init_w=0.003):
    ks = jax.random.split(key, 10)
    u = lambda k, shape, s: jax.random.uniform(k, shape, jnp.float32, -s, s)
    return {
        "w1": u(ks[0], (hidden_dim, input_dim), 0.1),
        "b1": u(ks[1], (hidden_dim,), 0.1),
        "wih": u(ks[2], (4 * hidden_dim, hidden_dim), 0.1),
        "whh": u(ks[3], (4 * hidden_dim, hidden_dim), 0.1),
        "bih": u(ks[4], (4 * hidden_dim,), 0.1),
        "bhh": u(ks[5], (4 * hidden_dim,), 0.1),
        "w2": u(ks[6], (hidden_dim, hidden_dim), 0.1),
        "b2": u(ks[7], (hidden_dim,), 0.1),
        "wm": u(ks[8], (latent_dim, hidden_dim), init_w),
        "bm": u(ks[9], (latent_dim,), init_w),
    }


if __name__ == "__main__":
    B, S, F = 2, 8, 16      # batch, seq, input_dim
    H, L = 32, 8            # hidden_dim, latent_dim

    key = jax.random.PRNGKey(0)
    k_x, k_p = jax.random.split(key)
    x = jax.random.normal(k_x, (B, S, F), jnp.float32)
    params = _make_params(k_p, F, L, H)

    # hidden_in analogous to self.hidden_in (zeros), broadcast to batch B
    h0 = jnp.zeros((1, B, H), jnp.float32)
    c0 = jnp.zeros((1, B, H), jnp.float32)

    # --- S > 1 path (out[:, -2:, :]) -----------------------------------------
    mu, (h_n, c_n) = recurrent_latent_encoder_det(x, (h0, c0), params)
    jax.block_until_ready((mu, h_n, c_n))

    mu_ref, (hn_ref, cn_ref) = _reference(x, (h0, c0), params)
    assert mu.shape == (B, 2, L) and h_n.shape == (1, B, H) and c_n.shape == (1, B, H)
    assert jnp.allclose(mu, mu_ref, atol=1e-5, rtol=1e-5)
    assert jnp.allclose(h_n, hn_ref, atol=1e-5, rtol=1e-5)
    assert jnp.allclose(c_n, cn_ref, atol=1e-5, rtol=1e-5)

    # --- S == 1 path (out[:, -1, :]) ------------------------------------------
    x1 = x[:, :1, :]
    mu1, (h1_n, c1_n) = recurrent_latent_encoder_det(x1, (h0, c0), params)
    jax.block_until_ready((mu1, h1_n, c1_n))
    mu1_ref, (hn1_ref, cn1_ref) = _reference(x1, (h0, c0), params)
    assert mu1.shape == (B, L)
    assert jnp.allclose(mu1, mu1_ref, atol=1e-5, rtol=1e-5)
    assert jnp.allclose(h1_n, hn1_ref, atol=1e-5, rtol=1e-5)
    assert jnp.allclose(c1_n, cn1_ref, atol=1e-5, rtol=1e-5)

    print("KERNEL_OK")
</pallas_src>

<mosaic_0001>
module attributes {stable_mosaic.version = 11 : i64} {
  func.func @_encoder_kernel(%arg0: memref<16x16xf32, #tpu.memory_space<vmem>>, %arg1: memref<2x64xf32, #tpu.memory_space<vmem>>, %arg2: memref<244x128xf32, #tpu.memory_space<vmem>>, %arg3: memref<6x128xf32, #tpu.memory_space<vmem>>) attributes {dimension_semantics = [], scalar_prefetch = 0 : i64, scratch_operands = 0 : i64, tpu.core_type = #tpu.core_type<tc>} {
    %c0 = arith.constant 0 : index
    %c0_0 = arith.constant 0 : index
    %0 = vector.load %arg2[%c0, %c0_0] : memref<244x128xf32, #tpu.memory_space<vmem>>, vector<16x32xf32>
    %c16 = arith.constant 16 : index
    %c0_1 = arith.constant 0 : index
    %1 = vector.load %arg2[%c16, %c0_1] : memref<244x128xf32, #tpu.memory_space<vmem>>, vector<32x128xf32>
    %c48 = arith.constant 48 : index
    %c0_2 = arith.constant 0 : index
    %2 = vector.load %arg2[%c48, %c0_2] : memref<244x128xf32, #tpu.memory_space<vmem>>, vector<32x32xf32>
    %c80 = arith.constant 80 : index
    %c0_3 = arith.constant 0 : index
    %3 = vector.load %arg2[%c80, %c0_3] : memref<244x128xf32, #tpu.memory_space<vmem>>, vector<32x32xf32>
    %c112 = arith.constant 112 : index
    %c0_4 = arith.constant 0 : index
    %4 = vector.load %arg2[%c112, %c0_4] : memref<244x128xf32, #tpu.memory_space<vmem>>, vector<32x32xf32>
    %c144 = arith.constant 144 : index
    %c0_5 = arith.constant 0 : index
    %5 = vector.load %arg2[%c144, %c0_5] : memref<244x128xf32, #tpu.memory_space<vmem>>, vector<32x32xf32>
    %c176 = arith.constant 176 : index
    %c0_6 = arith.constant 0 : index
    %6 = vector.load %arg2[%c176, %c0_6] : memref<244x128xf32, #tpu.memory_space<vmem>>, vector<32x32xf32>
    %c208 = arith.constant 208 : index
    %c0_7 = arith.constant 0 : index
    %7 = vector.load %arg2[%c208, %c0_7] : memref<244x128xf32, #tpu.memory_space<vmem>>, vector<32x8xf32>
    %c240 = arith.constant 240 : index
    %c0_8 = arith.constant 0 : index
    %8 = vector.load %arg2[%c240, %c0_8] : memref<244x128xf32, #tpu.memory_space<vmem>>, vector<1x32xf32>
    %c241 = arith.constant 241 : index
    %c0_9 = arith.constant 0 : index
    %9 = vector.load %arg2[%c241, %c0_9] : memref<244x128xf32, #tpu.memory_space<vmem>>, vector<1x128xf32>
    %c242 = arith.constant 242 : index
    %c0_10 = arith.constant 0 : index
    %10 = vector.load %arg2[%c242, %c0_10] : memref<244x128xf32, #tpu.memory_space<vmem>>, vector<1x32xf32>
    %c243 = arith.constant 243 : index
    %c0_11 = arith.constant 0 : index
    %11 = vector.load %arg2[%c243, %c0_11] : memref<244x128xf32, #tpu.memory_space<vmem>>, vector<1x8xf32>
    %c0_12 = arith.constant 0 : index
    %c0_13 = arith.constant 0 : index
    %12 = vector.load %arg0[%c0_12, %c0_13] : memref<16x16xf32, #tpu.memory_space<vmem>>, vector<16x16xf32>
    %cst = arith.constant dense<0.000000e+00> : vector<16x32xf32>
    %13 = tpu.matmul %12, %0, %cst {dimension_numbers = #tpu.dot_dimension_numbers<[1], [0], [0], [1], [0, 0, 1, 1], [], []>} : vector<16x16xf32>, vector<16x32xf32>, vector<16x32xf32> -> vector<16x32xf32>
    %14 = vector.broadcast %8 : vector<1x32xf32> to vector<16x32xf32>
    %15 = arith.addf %13, %14 : vector<16x32xf32>
    %cst_14 = arith.constant 0.000000e+00 : f32
    %16 = vector.broadcast %cst_14 : f32 to vector<16x32xf32>
    %17 = arith.maximumf %15, %16 : vector<16x32xf32>
    %cst_15 = arith.constant dense<0.000000e+00> : vector<16x128xf32>
    %18 = tpu.matmul %17, %1, %cst_15 {dimension_numbers = #tpu.dot_dimension_numbers<[1], [0], [0], [1], [0, 0, 1, 1], [], []>} : vector<16x32xf32>, vector<32x128xf32>, vector<16x128xf32> -> vector<16x128xf32>
    %19 = vector.broadcast %9 : vector<1x128xf32> to vector<16x128xf32>
    %20 = arith.addf %18, %19 : vector<16x128xf32>
    %21 = vector.extract_strided_slice %20 {offsets = [0, 0], sizes = [16, 32], strides = [1, 1]} : vector<16x128xf32> to vector<16x32xf32>
    %22 = vector.extract_strided_slice %20 {offsets = [0, 32], sizes = [16, 32], strides = [1, 1]} : vector<16x128xf32> to vector<16x32xf32>
    %23 = vector.extract_strided_slice %20 {offsets = [0, 64], sizes = [16, 32], strides = [1, 1]} : vector<16x128xf32> to vector<16x32xf32>
    %24 = vector.extract_strided_slice %20 {offsets = [0, 96], sizes = [16, 32], strides = [1, 1]} : vector<16x128xf32> to vector<16x32xf32>
    %c0_16 = arith.constant 0 : index
    %c0_17 = arith.constant 0 : index
    %25 = vector.load %arg1[%c0_16, %c0_17] : memref<2x64xf32, #tpu.memory_space<vmem>>, vector<2x32xf32>
    %c0_18 = arith.constant 0 : index
    %c32 = arith.constant 32 : index
    %26 = vector.load %arg1[%c0_18, %c32] : memref<2x64xf32, #tpu.memory_space<vmem>>, vector<2x32xf32>
    %27 = vector.extract_strided_slice %21 {offsets = [0, 0], sizes = [2, 32], strides = [1, 1]} : vector<16x32xf32> to vector<2x32xf32>
    %cst_19 = arith.constant dense<0.000000e+00> : vector<2x32xf32>
    %28 = tpu.matmul %25, %2, %cst_19 {dimension_numbers = #tpu.dot_dimension_numbers<[1], [0], [0], [1], [0, 0, 1, 1], [], []>} : vector<2x32xf32>, vector<32x32xf32>, vector<2x32xf32> -> vector<2x32xf32>
    %29 = arith.addf %27, %28 : vector<2x32xf32>
    %30 = vector.extract_strided_slice %22 {offsets = [0, 0], sizes = [2, 32], strides = [1, 1]} : vector<16x32xf32> to vector<2x32xf32>
    %cst_20 = arith.constant dense<0.000000e+00> : vector<2x32xf32>
    %31 = tpu.matmul %25, %3, %cst_20 {dimension_numbers = #tpu.dot_dimension_numbers<[1], [0], [0], [1], [0, 0, 1, 1], [], []>} : vector<2x32xf32>, vector<32x32xf32>, vector<2x32xf32> -> vector<2x32xf32>
    %32 = arith.addf %30, %31 : vector<2x32xf32>
    %33 = vector.extract_strided_slice %23 {offsets = [0, 0], sizes = [2, 32], strides = [1, 1]} : vector<16x32xf32> to vector<2x32xf32>
    %cst_21 = arith.constant dense<0.000000e+00> : vector<2x32xf32>
    %34 = tpu.matmul %25, %4, %cst_21 {dimension_numbers = #tpu.dot_dimension_numbers<[1], [0], [0], [1], [0, 0, 1, 1], [], []>} : vector<2x32xf32>, vector<32x32xf32>, vector<2x32xf32> -> vector<2x32xf32>
    %35 = arith.addf %33, %34 : vector<2x32xf32>
    %36 = vector.extract_strided_slice %24 {offsets = [0, 0], sizes = [2, 32], strides = [1, 1]} : vector<16x32xf32> to vector<2x32xf32>
    %cst_22 = arith.constant dense<0.000000e+00> : vector<2x32xf32>
    %37 = tpu.matmul %25, %5, %cst_22 {dimension_numbers = #tpu.dot_dimension_numbers<[1], [0], [0], [1], [0, 0, 1, 1], [], []>} : vector<2x32xf32>, vector<32x32xf32>, vector<2x32xf32> -> vector<2x32xf32>
    %38 = arith.addf %36, %37 : vector<2x32xf32>
    %cst_23 = arith.constant 5.000000e-01 : f32
    %39 = vector.broadcast %cst_23 : f32 to vector<2x32xf32>
    %40 = arith.mulf %39, %29 : vector<2x32xf32>
    %41 = math.tanh %40 : vector<2x32xf32>
    %cst_24 = arith.constant 1.000000e+00 : f32
    %42 = vector.broadcast %cst_24 : f32 to vector<2x32xf32>
    %43 = arith.addf %42, %41 : vector<2x32xf32>
    %cst_25 = arith.constant 5.000000e-01 : f32
    %44 = vector.broadcast %cst_25 : f32 to vector<2x32xf32>
    %45 = arith.mulf %44, %43 : vector<2x32xf32>
    %cst_26 = arith.constant 5.000000e-01 : f32
    %46 = vector.broadcast %cst_26 : f32 to vector<2x32xf32>
    %47 = arith.mulf %46, %32 : vector<2x32xf32>
    %48 = math.tanh %47 : vector<2x32xf32>
    %cst_27 = arith.constant 1.000000e+00 : f32
    %49 = vector.broadcast %cst_27 : f32 to vector<2x32xf32>
    %50 = arith.addf %49, %48 : vector<2x32xf32>
    %cst_28 = arith.constant 5.000000e-01 : f32
    %51 = vector.broadcast %cst_28 : f32 to vector<2x32xf32>
    %52 = arith.mulf %51, %50 : vector<2x32xf32>
    %53 = math.tanh %35 : vector<2x32xf32>
    %cst_29 = arith.constant 5.000000e-01 : f32
    %54 = vector.broadcast %cst_29 : f32 to vector<2x32xf32>
    %55 = arith.mulf %54, %38 : vector<2x32xf32>
    %56 = math.tanh %55 : vector<2x32xf32>
    %cst_30 = arith.constant 1.000000e+00 : f32
    %57 = vector.broadcast %cst_30 : f32 to vector<2x32xf32>
    %58 = arith.addf %57, %56 : vector<2x32xf32>
    %cst_31 = arith.constant 5.000000e-01 : f32
    %59 = vector.broadcast %cst_31 : f32 to vector<2x32xf32>
    %60 = arith.mulf %59, %58 : vector<2x32xf32>
    %61 = arith.mulf %52, %26 : vector<2x32xf32>
    %62 = arith.mulf %45, %53 : vector<2x32xf32>
    %63 = arith.addf %61, %62 : vector<2x32xf32>
    %64 = math.tanh %63 : vector<2x32xf32>
    %65 = arith.mulf %60, %64 : vector<2x32xf32>
    %66 = vector.extract_strided_slice %21 {offsets = [2, 0], sizes = [2, 32], strides = [1, 1]} : vector<16x32xf32> to vector<2x32xf32>
    %cst_32 = arith.constant dense<0.000000e+00> : vector<2x32xf32>
    %67 = tpu.matmul %65, %2, %cst_32 {dimension_numbers = #tpu.dot_dimension_numbers<[1], [0], [0], [1], [0, 0, 1, 1], [], []>} : vector<2x32xf32>, vector<32x32xf32>, vector<2x32xf32> -> vector<2x32xf32>
    %68 = arith.addf %66, %67 : vector<2x32xf32>
    %69 = vector.extract_strided_slice %22 {offsets = [2, 0], sizes = [2, 32], strides = [1, 1]} : vector<16x32xf32> to vector<2x32xf32>
    %cst_33 = arith.constant dense<0.000000e+00> : vector<2x32xf32>
    %70 = tpu.matmul %65, %3, %cst_33 {dimension_numbers = #tpu.dot_dimension_numbers<[1], [0], [0], [1], [0, 0, 1, 1], [], []>} : vector<2x32xf32>, vector<32x32xf32>, vector<2x32xf32> -> vector<2x32xf32>
    %71 = arith.addf %69, %70 : vector<2x32xf32>
    %72 = vector.extract_strided_slice %23 {offsets = [2, 0], sizes = [2, 32], strides = [1, 1]} : vector<16x32xf32> to vector<2x32xf32>
    %cst_34 = arith.constant dense<0.000000e+00> : vector<2x32xf32>
    %73 = tpu.matmul %65, %4, %cst_34 {dimension_numbers = #tpu.dot_dimension_numbers<[1], [0], [0], [1], [0, 0, 1, 1], [], []>} : vector<2x32xf32>, vector<32x32xf32>, vector<2x32xf32> -> vector<2x32xf32>
    %74 = arith.addf %72, %73 : vector<2x32xf32>
    %75 = vector.extract_strided_slice %24 {offsets = [2, 0], sizes = [2, 32], strides = [1, 1]} : vector<16x32xf32> to vector<2x32xf32>
    %cst_35 = arith.constant dense<0.000000e+00> : vector<2x32xf32>
    %76 = tpu.matmul %65, %5, %cst_35 {dimension_numbers = #tpu.dot_dimension_numbers<[1], [0], [0], [1], [0, 0, 1, 1], [], []>} : vector<2x32xf32>, vector<32x32xf32>, vector<2x32xf32> -> vector<2x32xf32>
    %77 = arith.addf %75, %76 : vector<2x32xf32>
    %cst_36 = arith.constant 5.000000e-01 : f32
    %78 = vector.broadcast %cst_36 : f32 to vector<2x32xf32>
    %79 = arith.mulf %78, %68 : vector<2x32xf32>
    %80 = math.tanh %79 : vector<2x32xf32>
    %cst_37 = arith.constant 1.000000e+00 : f32
    %81 = vector.broadcast %cst_37 : f32 to vector<2x32xf32>
    %82 = arith.addf %81, %80 : vector<2x32xf32>
    %cst_38 = arith.constant 5.000000e-01 : f32
    %83 = vector.broadcast %cst_38 : f32 to vector<2x32xf32>
    %84 = arith.mulf %83, %82 : vector<2x32xf32>
    %cst_39 = arith.constant 5.000000e-01 : f32
    %85 = vector.broadcast %cst_39 : f32 to vector<2x32xf32>
    %86 = arith.mulf %85, %71 : vector<2x32xf32>
    %87 = math.tanh %86 : vector<2x32xf32>
    %cst_40 = arith.constant 1.000000e+00 : f32
    %88 = vector.broadcast %cst_40 : f32 to vector<2x32xf32>
    %89 = arith.addf %88, %87 : vector<2x32xf32>
    %cst_41 = arith.constant 5.000000e-01 : f32
    %90 = vector.broadcast %cst_41 : f32 to vector<2x32xf32>
    %91 = arith.mulf %90, %89 : vector<2x32xf32>
    %92 = math.tanh %74 : vector<2x32xf32>
    %cst_42 = arith.constant 5.000000e-01 : f32
    %93 = vector.broadcast %cst_42 : f32 to vector<2x32xf32>
    %94 = arith.mulf %93, %77 : vector<2x32xf32>
    %95 = math.tanh %94 : vector<2x32xf32>
    %cst_43 = arith.constant 1.000000e+00 : f32
    %96 = vector.broadcast %cst_43 : f32 to vector<2x32xf32>
    %97 = arith.addf %96, %95 : vector<2x32xf32>
    %cst_44 = arith.constant 5.000000e-01 : f32
    %98 = vector.broadcast %cst_44 : f32 to vector<2x32xf32>
    %99 = arith.mulf %98, %97 : vector<2x32xf32>
    %100 = arith.mulf %91, %63 : vector<2x32xf32>
    %101 = arith.mulf %84, %92 : vector<2x32xf32>
    %102 = arith.addf %100, %101 : vector<2x32xf32>
    %103 = math.tanh %102 : vector<2x32xf32>
    %104 = arith.mulf %99, %103 : vector<2x32xf32>
    %105 = vector.extract_strided_slice %21 {offsets = [4, 0], sizes = [2, 32], strides = [1, 1]} : vector<16x32xf32> to vector<2x32xf32>
    %cst_45 = arith.constant dense<0.000000e+00> : vector<2x32xf32>
    %106 = tpu.matmul %104, %2, %cst_45 {dimension_numbers = #tpu.dot_dimension_numbers<[1], [0], [0], [1], [0, 0, 1, 1], [], []>} : vector<2x32xf32>, vector<32x32xf32>, vector<2x32xf32> -> vector<2x32xf32>
    %107 = arith.addf %105, %106 : vector<2x32xf32>
    %108 = vector.extract_strided_slice %22 {offsets = [4, 0], sizes = [2, 32], strides = [1, 1]} : vector<16x32xf32> to vector<2x32xf32>
    %cst_46 = arith.constant dense<0.000000e+00> : vector<2x32xf32>
    %109 = tpu.matmul %104, %3, %cst_46 {dimension_numbers = #tpu.dot_dimension_numbers<[1], [0], [0], [1], [0, 0, 1, 1], [], []>} : vector<2x32xf32>, vector<32x32xf32>, vector<2x32xf32> -> vector<2x32xf32>
    %110 = arith.addf %108, %109 : vector<2x32xf32>
    %111 = vector.extract_strided_slice %23 {offsets = [4, 0], sizes = [2, 32], strides = [1, 1]} : vector<16x32xf32> to vector<2x32xf32>
    %cst_47 = arith.constant dense<0.000000e+00> : vector<2x32xf32>
    %112 = tpu.matmul %104, %4, %cst_47 {dimension_numbers = #tpu.dot_dimension_numbers<[1], [0], [0], [1], [0, 0, 1, 1], [], []>} : vector<2x32xf32>, vector<32x32xf32>, vector<2x32xf32> -> vector<2x32xf32>
    %113 = arith.addf %111, %112 : vector<2x32xf32>
    %114 = vector.extract_strided_slice %24 {offsets = [4, 0], sizes = [2, 32], strides = [1, 1]} : vector<16x32xf32> to vector<2x32xf32>
    %cst_48 = arith.constant dense<0.000000e+00> : vector<2x32xf32>
    %115 = tpu.matmul %104, %5, %cst_48 {dimension_numbers = #tpu.dot_dimension_numbers<[1], [0], [0], [1], [0, 0, 1, 1], [], []>} : vector<2x32xf32>, vector<32x32xf32>, vector<2x32xf32> -> vector<2x32xf32>
    %116 = arith.addf %114, %115 : vector<2x32xf32>
    %cst_49 = arith.constant 5.000000e-01 : f32
    %117 = vector.broadcast %cst_49 : f32 to vector<2x32xf32>
    %118 = arith.mulf %117, %107 : vector<2x32xf32>
    %119 = math.tanh %118 : vector<2x32xf32>
    %cst_50 = arith.constant 1.000000e+00 : f32
    %120 = vector.broadcast %cst_50 : f32 to vector<2x32xf32>
    %121 = arith.addf %120, %119 : vector<2x32xf32>
    %cst_51 = arith.constant 5.000000e-01 : f32
    %122 = vector.broadcast %cst_51 : f32 to vector<2x32xf32>
    %123 = arith.mulf %122, %121 : vector<2x32xf32>
    %cst_52 = arith.constant 5.000000e-01 : f32
    %124 = vector.broadcast %cst_52 : f32 to vector<2x32xf32>
    %125 = arith.mulf %124, %110 : vector<2x32xf32>
    %126 = math.tanh %125 : vector<2x32xf32>
    %cst_53 = arith.constant 1.000000e+00 : f32
    %127 = vector.broadcast %cst_53 : f32 to vector<2x32xf32>
    %128 = arith.addf %127, %126 : vector<2x32xf32>
    %cst_54 = arith.constant 5.000000e-01 : f32
    %129 = vector.broadcast %cst_54 : f32 to vector<2x32xf32>
    %130 = arith.mulf %129, %128 : vector<2x32xf32>
    %131 = math.tanh %113 : vector<2x32xf32>
    %cst_55 = arith.constant 5.000000e-01 : f32
    %132 = vector.broadcast %cst_55 : f32 to vector<2x32xf32>
    %133 = arith.mulf %132, %116 : vector<2x32xf32>
    %134 = math.tanh %133 : vector<2x32xf32>
    %cst_56 = arith.constant 1.000000e+00 : f32
    %135 = vector.broadcast %cst_56 : f32 to vector<2x32xf32>
    %136 = arith.addf %135, %134 : vector<2x32xf32>
    %cst_57 = arith.constant 5.000000e-01 : f32
    %137 = vector.broadcast %cst_57 : f32 to vector<2x32xf32>
    %138 = arith.mulf %137, %136 : vector<2x32xf32>
    %139 = arith.mulf %130, %102 : vector<2x32xf32>
    %140 = arith.mulf %123, %131 : vector<2x32xf32>
    %141 = arith.addf %139, %140 : vector<2x32xf32>
    %142 = math.tanh %141 : vector<2x32xf32>
    %143 = arith.mulf %138, %142 : vector<2x32xf32>
    %144 = vector.extract_strided_slice %21 {offsets = [6, 0], sizes = [2, 32], strides = [1, 1]} : vector<16x32xf32> to vector<2x32xf32>
    %cst_58 = arith.constant dense<0.000000e+00> : vector<2x32xf32>
    %145 = tpu.matmul %143, %2, %cst_58 {dimension_numbers = #tpu.dot_dimension_numbers<[1], [0], [0], [1], [0, 0, 1, 1], [], []>} : vector<2x32xf32>, vector<32x32xf32>, vector<2x32xf32> -> vector<2x32xf32>
    %146 = arith.addf %144, %145 : vector<2x32xf32>
    %147 = vector.extract_strided_slice %22 {offsets = [6, 0], sizes = [2, 32], strides = [1, 1]} : vector<16x32xf32> to vector<2x32xf32>
    %cst_59 = arith.constant dense<0.000000e+00> : vector<2x32xf32>
    %148 = tpu.matmul %143, %3, %cst_59 {dimension_numbers = #tpu.dot_dimension_numbers<[1], [0], [0], [1], [0, 0, 1, 1], [], []>} : vector<2x32xf32>, vector<32x32xf32>, vector<2x32xf32> -> vector<2x32xf32>
    %149 = arith.addf %147, %148 : vector<2x32xf32>
    %150 = vector.extract_strided_slice %23 {offsets = [6, 0], sizes = [2, 32], strides = [1, 1]} : vector<16x32xf32> to vector<2x32xf32>
    %cst_60 = arith.constant dense<0.000000e+00> : vector<2x32xf32>
    %151 = tpu.matmul %143, %4, %cst_60 {dimension_numbers = #tpu.dot_dimension_numbers<[1], [0], [0], [1], [0, 0, 1, 1], [], []>} : vector<2x32xf32>, vector<32x32xf32>, vector<2x32xf32> -> vector<2x32xf32>
    %152 = arith.addf %150, %151 : vector<2x32xf32>
    %153 = vector.extract_strided_slice %24 {offsets = [6, 0], sizes = [2, 32], strides = [1, 1]} : vector<16x32xf32> to vector<2x32xf32>
    %cst_61 = arith.constant dense<0.000000e+00> : vector<2x32xf32>
    %154 = tpu.matmul %143, %5, %cst_61 {dimension_numbers = #tpu.dot_dimension_numbers<[1], [0], [0], [1], [0, 0, 1, 1], [], []>} : vector<2x32xf32>, vector<32x32xf32>, vector<2x32xf32> -> vector<2x32xf32>
    %155 = arith.addf %153, %154 : vector<2x32xf32>
    %cst_62 = arith.constant 5.000000e-01 : f32
    %156 = vector.broadcast %cst_62 : f32 to vector<2x32xf32>
    %157 = arith.mulf %156, %146 : vector<2x32xf32>
    %158 = math.tanh %157 : vector<2x32xf32>
    %cst_63 = arith.constant 1.000000e+00 : f32
    %159 = vector.broadcast %cst_63 : f32 to vector<2x32xf32>
    %160 = arith.addf %159, %158 : vector<2x32xf32>
    %cst_64 = arith.constant 5.000000e-01 : f32
    %161 = vector.broadcast %cst_64 : f32 to vector<2x32xf32>
    %162 = arith.mulf %161, %160 : vector<2x32xf32>
    %cst_65 = arith.constant 5.000000e-01 : f32
    %163 = vector.broadcast %cst_65 : f32 to vector<2x32xf32>
    %164 = arith.mulf %163, %149 : vector<2x32xf32>
    %165 = math.tanh %164 : vector<2x32xf32>
    %cst_66 = arith.constant 1.000000e+00 : f32
    %166 = vector.broadcast %cst_66 : f32 to vector<2x32xf32>
    %167 = arith.addf %166, %165 : vector<2x32xf32>
    %cst_67 = arith.constant 5.000000e-01 : f32
    %168 = vector.broadcast %cst_67 : f32 to vector<2x32xf32>
    %169 = arith.mulf %168, %167 : vector<2x32xf32>
    %170 = math.tanh %152 : vector<2x32xf32>
    %cst_68 = arith.constant 5.000000e-01 : f32
    %171 = vector.broadcast %cst_68 : f32 to vector<2x32xf32>
    %172 = arith.mulf %171, %155 : vector<2x32xf32>
    %173 = math.tanh %172 : vector<2x32xf32>
    %cst_69 = arith.constant 1.000000e+00 : f32
    %174 = vector.broadcast %cst_69 : f32 to vector<2x32xf32>
    %175 = arith.addf %174, %173 : vector<2x32xf32>
    %cst_70 = arith.constant 5.000000e-01 : f32
    %176 = vector.broadcast %cst_70 : f32 to vector<2x32xf32>
    %177 = arith.mulf %176, %175 : vector<2x32xf32>
    %178 = arith.mulf %169, %141 : vector<2x32xf32>
    %179 = arith.mulf %162, %170 : vector<2x32xf32>
    %180 = arith.addf %178, %179 : vector<2x32xf32>
    %181 = math.tanh %180 : vector<2x32xf32>
    %182 = arith.mulf %177, %181 : vector<2x32xf32>
    %183 = vector.extract_strided_slice %21 {offsets = [8, 0], sizes = [2, 32], strides = [1, 1]} : vector<16x32xf32> to vector<2x32xf32>
    %cst_71 = arith.constant dense<0.000000e+00> : vector<2x32xf32>
    %184 = tpu.matmul %182, %2, %cst_71 {dimension_numbers = #tpu.dot_dimension_numbers<[1], [0], [0], [1], [0, 0, 1, 1], [], []>} : vector<2x32xf32>, vector<32x32xf32>, vector<2x32xf32> -> vector<2x32xf32>
    %185 = arith.addf %183, %184 : vector<2x32xf32>
    %186 = vector.extract_strided_slice %22 {offsets = [8, 0], sizes = [2, 32], strides = [1, 1]} : vector<16x32xf32> to vector<2x32xf32>
    %cst_72 = arith.constant dense<0.000000e+00> : vector<2x32xf32>
    %187 = tpu.matmul %182, %3, %cst_72 {dimension_numbers = #tpu.dot_dimension_numbers<[1], [0], [0], [1], [0, 0, 1, 1], [], []>} : vector<2x32xf32>, vector<32x32xf32>, vector<2x32xf32> -> vector<2x32xf32>
    %188 = arith.addf %186, %187 : vector<2x32xf32>
    %189 = vector.extract_strided_slice %23 {offsets = [8, 0], sizes = [2, 32], strides = [1, 1]} : vector<16x32xf32> to vector<2x32xf32>
    %cst_73 = arith.constant dense<0.000000e+00> : vector<2x32xf32>
    %190 = tpu.matmul %182, %4, %cst_73 {dimension_numbers = #tpu.dot_dimension_numbers<[1], [0], [0], [1], [0, 0, 1, 1], [], []>} : vector<2x32xf32>, vector<32x32xf32>, vector<2x32xf32> -> vector<2x32xf32>
    %191 = arith.addf %189, %190 : vector<2x32xf32>
    %192 = vector.extract_strided_slice %24 {offsets = [8, 0], sizes = [2, 32], strides = [1, 1]} : vector<16x32xf32> to vector<2x32xf32>
    %cst_74 = arith.constant dense<0.000000e+00> : vector<2x32xf32>
    %193 = tpu.matmul %182, %5, %cst_74 {dimension_numbers = #tpu.dot_dimension_numbers<[1], [0], [0], [1], [0, 0, 1, 1], [], []>} : vector<2x32xf32>, vector<32x32xf32>, vector<2x32xf32> -> vector<2x32xf32>
    %194 = arith.addf %192, %193 : vector<2x32xf32>
    %cst_75 = arith.constant 5.000000e-01 : f32
    %195 = vector.broadcast %cst_75 : f32 to vector<2x32xf32>
    %196 = arith.mulf %195, %185 : vector<2x32xf32>
    %197 = math.tanh %196 : vector<2x32xf32>
    %cst_76 = arith.constant 1.000000e+00 : f32
    %198 = vector.broadcast %cst_76 : f32 to vector<2x32xf32>
    %199 = arith.addf %198, %197 : vector<2x32xf32>
    %cst_77 = arith.constant 5.000000e-01 : f32
    %200 = vector.broadcast %cst_77 : f32 to vector<2x32xf32>
    %201 = arith.mulf %200, %199 : vector<2x32xf32>
    %cst_78 = arith.constant 5.000000e-01 : f32
    %202 = vector.broadcast %cst_78 : f32 to vector<2x32xf32>
    %203 = arith.mulf %202, %188 : vector<2x32xf32>
    %204 = math.tanh %203 : vector<2x32xf32>
    %cst_79 = arith.constant 1.000000e+00 : f32
    %205 = vector.broadcast %cst_79 : f32 to vector<2x32xf32>
    %206 = arith.addf %205, %204 : vector<2x32xf32>
    %cst_80 = arith.constant 5.000000e-01 : f32
    %207 = vector.broadcast %cst_80 : f32 to vector<2x32xf32>
    %208 = arith.mulf %207, %206 : vector<2x32xf32>
    %209 = math.tanh %191 : vector<2x32xf32>
    %cst_81 = arith.constant 5.000000e-01 : f32
    %210 = vector.broadcast %cst_81 : f32 to vector<2x32xf32>
    %211 = arith.mulf %210, %194 : vector<2x32xf32>
    %212 = math.tanh %211 : vector<2x32xf32>
    %cst_82 = arith.constant 1.000000e+00 : f32
    %213 = vector.broadcast %cst_82 : f32 to vector<2x32xf32>
    %214 = arith.addf %213, %212 : vector<2x32xf32>
    %cst_83 = arith.constant 5.000000e-01 : f32
    %215 = vector.broadcast %cst_83 : f32 to vector<2x32xf32>
    %216 = arith.mulf %215, %214 : vector<2x32xf32>
    %217 = arith.mulf %208, %180 : vector<2x32xf32>
    %218 = arith.mulf %201, %209 : vector<2x32xf32>
    %219 = arith.addf %217, %218 : vector<2x32xf32>
    %220 = math.tanh %219 : vector<2x32xf32>
    %221 = arith.mulf %216, %220 : vector<2x32xf32>
    %222 = vector.extract_strided_slice %21 {offsets = [10, 0], sizes = [2, 32], strides = [1, 1]} : vector<16x32xf32> to vector<2x32xf32>
    %cst_84 = arith.constant dense<0.000000e+00> : vector<2x32xf32>
    %223 = tpu.matmul %221, %2, %cst_84 {dimension_numbers = #tpu.dot_dimension_numbers<[1], [0], [0], [1], [0, 0, 1, 1], [], []>} : vector<2x32xf32>, vector<32x32xf32>, vector<2x32xf32> -> vector<2x32xf32>
    %224 = arith.addf %222, %223 : vector<2x32xf32>
    %225 = vector.extract_strided_slice %22 {offsets = [10, 0], sizes = [2, 32], strides = [1, 1]} : vector<16x32xf32> to vector<2x32xf32>
    %cst_85 = arith.constant dense<0.000000e+00> : vector<2x32xf32>
    %226 = tpu.matmul %221, %3, %cst_85 {dimension_numbers = #tpu.dot_dimension_numbers<[1], [0], [0], [1], [0, 0, 1, 1], [], []>} : vector<2x32xf32>, vector<32x32xf32>, vector<2x32xf32> -> vector<2x32xf32>
    %227 = arith.addf %225, %226 : vector<2x32xf32>
    %228 = vector.extract_strided_slice %23 {offsets = [10, 0], sizes = [2, 32], strides = [1, 1]} : vector<16x32xf32> to vector<2x32xf32>
    %cst_86 = arith.constant dense<0.000000e+00> : vector<2x32xf32>
    %229 = tpu.matmul %221, %4, %cst_86 {dimension_numbers = #tpu.dot_dimension_numbers<[1], [0], [0], [1], [0, 0, 1, 1], [], []>} : vector<2x32xf32>, vector<32x32xf32>, vector<2x32xf32> -> vector<2x32xf32>
    %230 = arith.addf %228, %229 : vector<2x32xf32>
    %231 = vector.extract_strided_slice %24 {offsets = [10, 0], sizes = [2, 32], strides = [1, 1]} : vector<16x32xf32> to vector<2x32xf32>
    %cst_87 = arith.constant dense<0.000000e+00> : vector<2x32xf32>
    %232 = tpu.matmul %221, %5, %cst_87 {dimension_numbers = #tpu.dot_dimension_numbers<[1], [0], [0], [1], [0, 0, 1, 1], [], []>} : vector<2x32xf32>, vector<32x32xf32>, vector<2x32xf32> -> vector<2x32xf32>
    %233 = arith.addf %231, %232 : vector<2x32xf32>
    %cst_88 = arith.constant 5.000000e-01 : f32
    %234 = vector.broadcast %cst_88 : f32 to vector<2x32xf32>
    %235 = arith.mulf %234, %224 : vector<2x32xf32>
    %236 = math.tanh %235 : vector<2x32xf32>
    %cst_89 = arith.constant 1.000000e+00 : f32
    %237 = vector.broadcast %cst_89 : f32 to vector<2x32xf32>
    %238 = arith.addf %237, %236 : vector<2x32xf32>
    %cst_90 = arith.constant 5.000000e-01 : f32
    %239 = vector.broadcast %cst_90 : f32 to vector<2x32xf32>
    %240 = arith.mulf %239, %238 : vector<2x32xf32>
    %cst_91 = arith.constant 5.000000e-01 : f32
    %241 = vector.broadcast %cst_91 : f32 to vector<2x32xf32>
    %242 = arith.mulf %241, %227 : vector<2x32xf32>
    %243 = math.tanh %242 : vector<2x32xf32>
    %cst_92 = arith.constant 1.000000e+00 : f32
    %244 = vector.broadcast %cst_92 : f32 to vector<2x32xf32>
    %245 = arith.addf %244, %243 : vector<2x32xf32>
    %cst_93 = arith.constant 5.000000e-01 : f32
    %246 = vector.broadcast %cst_93 : f32 to vector<2x32xf32>
    %247 = arith.mulf %246, %245 : vector<2x32xf32>
    %248 = math.tanh %230 : vector<2x32xf32>
    %cst_94 = arith.constant 5.000000e-01 : f32
    %249 = vector.broadcast %cst_94 : f32 to vector<2x32xf32>
    %250 = arith.mulf %249, %233 : vector<2x32xf32>
    %251 = math.tanh %250 : vector<2x32xf32>
    %cst_95 = arith.constant 1.000000e+00 : f32
    %252 = vector.broadcast %cst_95 : f32 to vector<2x32xf32>
    %253 = arith.addf %252, %251 : vector<2x32xf32>
    %cst_96 = arith.constant 5.000000e-01 : f32
    %254 = vector.broadcast %cst_96 : f32 to vector<2x32xf32>
    %255 = arith.mulf %254, %253 : vector<2x32xf32>
    %256 = arith.mulf %247, %219 : vector<2x32xf32>
    %257 = arith.mulf %240, %248 : vector<2x32xf32>
    %258 = arith.addf %256, %257 : vector<2x32xf32>
    %259 = math.tanh %258 : vector<2x32xf32>
    %260 = arith.mulf %255, %259 : vector<2x32xf32>
    %261 = vector.extract_strided_slice %21 {offsets = [12, 0], sizes = [2, 32], strides = [1, 1]} : vector<16x32xf32> to vector<2x32xf32>
    %cst_97 = arith.constant dense<0.000000e+00> : vector<2x32xf32>
    %262 = tpu.matmul %260, %2, %cst_97 {dimension_numbers = #tpu.dot_dimension_numbers<[1], [0], [0], [1], [0, 0, 1, 1], [], []>} : vector<2x32xf32>, vector<32x32xf32>, vector<2x32xf32> -> vector<2x32xf32>
    %263 = arith.addf %261, %262 : vector<2x32xf32>
    %264 = vector.extract_strided_slice %22 {offsets = [12, 0], sizes = [2, 32], strides = [1, 1]} : vector<16x32xf32> to vector<2x32xf32>
    %cst_98 = arith.constant dense<0.000000e+00> : vector<2x32xf32>
    %265 = tpu.matmul %260, %3, %cst_98 {dimension_numbers = #tpu.dot_dimension_numbers<[1], [0], [0], [1], [0, 0, 1, 1], [], []>} : vector<2x32xf32>, vector<32x32xf32>, vector<2x32xf32> -> vector<2x32xf32>
    %266 = arith.addf %264, %265 : vector<2x32xf32>
    %267 = vector.extract_strided_slice %23 {offsets = [12, 0], sizes = [2, 32], strides = [1, 1]} : vector<16x32xf32> to vector<2x32xf32>
    %cst_99 = arith.constant dense<0.000000e+00> : vector<2x32xf32>
    %268 = tpu.matmul %260, %4, %cst_99 {dimension_numbers = #tpu.dot_dimension_numbers<[1], [0], [0], [1], [0, 0, 1, 1], [], []>} : vector<2x32xf32>, vector<32x32xf32>, vector<2x32xf32> -> vector<2x32xf32>
    %269 = arith.addf %267, %268 : vector<2x32xf32>
    %270 = vector.extract_strided_slice %24 {offsets = [12, 0], sizes = [2, 32], strides = [1, 1]} : vector<16x32xf32> to vector<2x32xf32>
    %cst_100 = arith.constant dense<0.000000e+00> : vector<2x32xf32>
    %271 = tpu.matmul %260, %5, %cst_100 {dimension_numbers = #tpu.dot_dimension_numbers<[1], [0], [0], [1], [0, 0, 1, 1], [], []>} : vector<2x32xf32>, vector<32x32xf32>, vector<2x32xf32> -> vector<2x32xf32>
    %272 = arith.addf %270, %271 : vector<2x32xf32>
    %cst_101 = arith.constant 5.000000e-01 : f32
    %273 = vector.broadcast %cst_101 : f32 to vector<2x32xf32>
    %274 = arith.mulf %273, %263 : vector<2x32xf32>
    %275 = math.tanh %274 : vector<2x32xf32>
    %cst_102 = arith.constant 1.000000e+00 : f32
    %276 = vector.broadcast %cst_102 : f32 to vector<2x32xf32>
    %277 = arith.addf %276, %275 : vector<2x32xf32>
    %cst_103 = arith.constant 5.000000e-01 : f32
    %278 = vector.broadcast %cst_103 : f32 to vector<2x32xf32>
    %279 = arith.mulf %278, %277 : vector<2x32xf32>
    %cst_104 = arith.constant 5.000000e-01 : f32
    %280 = vector.broadcast %cst_104 : f32 to vector<2x32xf32>
    %281 = arith.mulf %280, %266 : vector<2x32xf32>
    %282 = math.tanh %281 : vector<2x32xf32>
    %cst_105 = arith.constant 1.000000e+00 : f32
    %283 = vector.broadcast %cst_105 : f32 to vector<2x32xf32>
    %284 = arith.addf %283, %282 : vector<2x32xf32>
    %cst_106 = arith.constant 5.000000e-01 : f32
    %285 = vector.broadcast %cst_106 : f32 to vector<2x32xf32>
    %286 = arith.mulf %285, %284 : vector<2x32xf32>
    %287 = math.tanh %269 : vector<2x32xf32>
    %cst_107 = arith.constant 5.000000e-01 : f32
    %288 = vector.broadcast %cst_107 : f32 to vector<2x32xf32>
    %289 = arith.mulf %288, %272 : vector<2x32xf32>
    %290 = math.tanh %289 : vector<2x32xf32>
    %cst_108 = arith.constant 1.000000e+00 : f32
    %291 = vector.broadcast %cst_108 : f32 to vector<2x32xf32>
    %292 = arith.addf %291, %290 : vector<2x32xf32>
    %cst_109 = arith.constant 5.000000e-01 : f32
    %293 = vector.broadcast %cst_109 : f32 to vector<2x32xf32>
    %294 = arith.mulf %293, %292 : vector<2x32xf32>
    %295 = arith.mulf %286, %258 : vector<2x32xf32>
    %296 = arith.mulf %279, %287 : vector<2x32xf32>
    %297 = arith.addf %295, %296 : vector<2x32xf32>
    %298 = math.tanh %297 : vector<2x32xf32>
    %299 = arith.mulf %294, %298 : vector<2x32xf32>
    %300 = vector.extract_strided_slice %21 {offsets = [14, 0], sizes = [2, 32], strides = [1, 1]} : vector<16x32xf32> to vector<2x32xf32>
    %cst_110 = arith.constant dense<0.000000e+00> : vector<2x32xf32>
    %301 = tpu.matmul %299, %2, %cst_110 {dimension_numbers = #tpu.dot_dimension_numbers<[1], [0], [0], [1], [0, 0, 1, 1], [], []>} : vector<2x32xf32>, vector<32x32xf32>, vector<2x32xf32> -> vector<2x32xf32>
    %302 = arith.addf %300, %301 : vector<2x32xf32>
    %303 = vector.extract_strided_slice %22 {offsets = [14, 0], sizes = [2, 32], strides = [1, 1]} : vector<16x32xf32> to vector<2x32xf32>
    %cst_111 = arith.constant dense<0.000000e+00> : vector<2x32xf32>
    %304 = tpu.matmul %299, %3, %cst_111 {dimension_numbers = #tpu.dot_dimension_numbers<[1], [0], [0], [1], [0, 0, 1, 1], [], []>} : vector<2x32xf32>, vector<32x32xf32>, vector<2x32xf32> -> vector<2x32xf32>
    %305 = arith.addf %303, %304 : vector<2x32xf32>
    %306 = vector.extract_strided_slice %23 {offsets = [14, 0], sizes = [2, 32], strides = [1, 1]} : vector<16x32xf32> to vector<2x32xf32>
    %cst_112 = arith.constant dense<0.000000e+00> : vector<2x32xf32>
    %307 = tpu.matmul %299, %4, %cst_112 {dimension_numbers = #tpu.dot_dimension_numbers<[1], [0], [0], [1], [0, 0, 1, 1], [], []>} : vector<2x32xf32>, vector<32x32xf32>, vector<2x32xf32> -> vector<2x32xf32>
    %308 = arith.addf %306, %307 : vector<2x32xf32>
    %309 = vector.extract_strided_slice %24 {offsets = [14, 0], sizes = [2, 32], strides = [1, 1]} : vector<16x32xf32> to vector<2x32xf32>
    %cst_113 = arith.constant dense<0.000000e+00> : vector<2x32xf32>
    %310 = tpu.matmul %299, %5, %cst_113 {dimension_numbers = #tpu.dot_dimension_numbers<[1], [0], [0], [1], [0, 0, 1, 1], [], []>} : vector<2x32xf32>, vector<32x32xf32>, vector<2x32xf32> -> vector<2x32xf32>
    %311 = arith.addf %309, %310 : vector<2x32xf32>
    %cst_114 = arith.constant 5.000000e-01 : f32
    %312 = vector.broadcast %cst_114 : f32 to vector<2x32xf32>
    %313 = arith.mulf %312, %302 : vector<2x32xf32>
    %314 = math.tanh %313 : vector<2x32xf32>
    %cst_115 = arith.constant 1.000000e+00 : f32
    %315 = vector.broadcast %cst_115 : f32 to vector<2x32xf32>
    %316 = arith.addf %315, %314 : vector<2x32xf32>
    %cst_116 = arith.constant 5.000000e-01 : f32
    %317 = vector.broadcast %cst_116 : f32 to vector<2x32xf32>
    %318 = arith.mulf %317, %316 : vector<2x32xf32>
    %cst_117 = arith.constant 5.000000e-01 : f32
    %319 = vector.broadcast %cst_117 : f32 to vector<2x32xf32>
    %320 = arith.mulf %319, %305 : vector<2x32xf32>
    %321 = math.tanh %320 : vector<2x32xf32>
    %cst_118 = arith.constant 1.000000e+00 : f32
    %322 = vector.broadcast %cst_118 : f32 to vector<2x32xf32>
    %323 = arith.addf %322, %321 : vector<2x32xf32>
    %cst_119 = arith.constant 5.000000e-01 : f32
    %324 = vector.broadcast %cst_119 : f32 to vector<2x32xf32>
    %325 = arith.mulf %324, %323 : vector<2x32xf32>
    %326 = math.tanh %308 : vector<2x32xf32>
    %cst_120 = arith.constant 5.000000e-01 : f32
    %327 = vector.broadcast %cst_120 : f32 to vector<2x32xf32>
    %328 = arith.mulf %327, %311 : vector<2x32xf32>
    %329 = math.tanh %328 : vector<2x32xf32>
    %cst_121 = arith.constant 1.000000e+00 : f32
    %330 = vector.broadcast %cst_121 : f32 to vector<2x32xf32>
    %331 = arith.addf %330, %329 : vector<2x32xf32>
    %cst_122 = arith.constant 5.000000e-01 : f32
    %332 = vector.broadcast %cst_122 : f32 to vector<2x32xf32>
    %333 = arith.mulf %332, %331 : vector<2x32xf32>
    %334 = arith.mulf %325, %297 : vector<2x32xf32>
    %335 = arith.mulf %318, %326 : vector<2x32xf32>
    %336 = arith.addf %334, %335 : vector<2x32xf32>
    %337 = math.tanh %336 : vector<2x32xf32>
    %338 = arith.mulf %333, %337 : vector<2x32xf32>
    %339 = tpu.concatenate %299, %338 in 0 : vector<2x32xf32>, vector<2x32xf32> -> vector<4x32xf32>
    %cst_123 = arith.constant dense<0.000000e+00> : vector<4x32xf32>
    %340 = tpu.matmul %339, %6, %cst_123 {dimension_numbers = #tpu.dot_dimension_numbers<[1], [0], [0], [1], [0, 0, 1, 1], [], []>} : vector<4x32xf32>, vector<32x32xf32>, vector<4x32xf32> -> vector<4x32xf32>
    %341 = vector.broadcast %10 : vector<1x32xf32> to vector<4x32xf32>
    %342 = arith.addf %340, %341 : vector<4x32xf32>
    %cst_124 = arith.constant 0.000000e+00 : f32
    %343 = vector.broadcast %cst_124 : f32 to vector<4x32xf32>
    %344 = arith.maximumf %342, %343 : vector<4x32xf32>
    %cst_125 = arith.constant dense<0.000000e+00> : vector<4x8xf32>
    %345 = tpu.matmul %344, %7, %cst_125 {dimension_numbers = #tpu.dot_dimension_numbers<[1], [0], [0], [1], [0, 0, 1, 1], [], []>} : vector<4x32xf32>, vector<32x8xf32>, vector<4x8xf32> -> vector<4x8xf32>
    %346 = vector.broadcast %11 : vector<1x8xf32> to vector<4x8xf32>
    %347 = arith.addf %345, %346 : vector<4x8xf32>
    %c0_126 = arith.constant 0 : index
    %c0_127 = arith.constant 0 : index
    %348 = vector.load %arg3[%c0_126, %c0_127] : memref<6x128xf32, #tpu.memory_space<vmem>>, vector<4x8xf32>
    tpu.vector_store %arg3[%c0_126, %c0_127], %347 {strides = array<i32>} : memref<6x128xf32, #tpu.memory_space<vmem>>, vector<4x8xf32>,
    %349 = tpu.concatenate %338, %336 in 1 : vector<2x32xf32>, vector<2x32xf32> -> vector<2x64xf32>
    %c4 = arith.constant 4 : index
    %c0_128 = arith.constant 0 : index
    %350 = vector.load %arg3[%c4, %c0_128] : memref<6x128xf32, #tpu.memory_space<vmem>>, vector<2x64xf32>
    tpu.vector_store %arg3[%c4, %c0_128], %349 {strides = array<i32>} : memref<6x128xf32, #tpu.memory_space<vmem>>, vector<2x64xf32>,
    return
  }
}

</mosaic_0001>

<bundles_post_ra>
// kernel: tpu_custom_call.1
= control target key start
LH: loop header
LB: loop body
LE: loop exit
PB: predicated region body
PF: predicated region fallthrough
CT: control target
= control target key end

     0   :  { %8 = vsyncpa [#allocation3], 0  ;;  %s4602_s0 = inlined_call_operand.hbm [shape: f32[16,16], index: 0, kind: input, shape index: {}]   ;;  %s4603_s1 = inlined_call_operand.vmem [shape: f32[2,64], index: 1, kind: input, shape index: {}]   ;;  %s4604_s2 = inlined_call_operand.hbm [shape: f32[244,128], index: 2, kind: input, shape index: {}]   ;;  %s4605_s3 = inlined_call_operand.hbm [shape: f32[6,128], index: 3, kind: output, shape index: {}]  }
   0x1   :  { %9 = vsyncpa [#allocation6], 0 }
   0x2   :  { %10 = vsyncpa [#allocation4], 0  ;;  %s4142_s12 = smov [#allocation2]   ;;  %s4070_s16 = scalar_lea.hbm %s4602_s0, 256 }
   0x3   :  { %s16_s13 = sshll.u32 %s4142_s12, 4  ;;  %p4071_p0 = scmp.ne.s32.totalorder %s4602_s0, %s4070_s16  ;;  %s17_s13 = int_to_ptr.vmem [resolvable:$true] %s16_s13 }
   0x4   :  { %p4074_p1 = scmp.lt.u32.totalorder %s4070_s16, %s4602_s0 }
   0x6   :  { %p4076_p2 = pnand %p4074_p1, %p4071_p0 }
   0x8   :  { %4079 = shalt.err (!%p4076_p2)
}
   0x9   :  { %s4080_s21 = scalar_lea.vmem %s17_s13, 256  ;;  %p4085_p4 = scmp.lt.s32.totalorder %s17_s13, %s17_s13 }
   0xa   :  { %p4081_p3 = scmp.ne.s32.totalorder %s17_s13, %s4080_s21  ;;  %p4086_p5 = scmp.lt.s32.totalorder %s4080_s21, %s4080_s21 }
   0xc   :  { %p4087_p6 = por %p4086_p5, %p4085_p4 }
   0xe   :  { %p4088_p7 = pnand %p4087_p6, %p4081_p3 }
  0x10   :  { %4091 = shalt.err (!%p4088_p7)
}
  0x11   :  { %s4143_s22 = smov 128   ;;  %s4144_s23 = smov 8  }
  0x12   :  { %22 = dma.hbm_to_vmem [thread:$0]  %s4602_s0, 256, %s17_s13, [#allocation3], %s4143_s22, %s4143_s22, %s4144_s23  }
  0x13   :  { %s4145_s26 = smov [#allocation5]   ;;  %s4092_s30 = scalar_lea.hbm %s4604_s2, 3968 }
  0x14   :  { %s30_s27 = sshll.u32 %s4145_s26, 4  ;;  %p4093_p8 = scmp.ne.s32.totalorder %s4604_s2, %s4092_s30  ;;  %s31_s27 = int_to_ptr.vmem [resolvable:$true] %s30_s27 }
  0x15   :  { %p4096_p9 = scmp.lt.u32.totalorder %s4092_s30, %s4604_s2 }
  0x17   :  { %p4098_p10 = pnand %p4096_p9, %p4093_p8 }
  0x19   :  { %4101 = shalt.err (!%p4098_p10)
}
  0x1a   :  { %s4102_s8 = scalar_lea.vmem %s31_s27, 3968  ;;  %p4107_p12 = scmp.lt.s32.totalorder %s31_s27, %s31_s27 }
  0x1b   :  { %p4103_p11 = scmp.ne.s32.totalorder %s31_s27, %s4102_s8  ;;  %p4108_p13 = scmp.lt.s32.totalorder %s4102_s8, %s4102_s8 }
  0x1d   :  { %p4109_p0 = por %p4108_p13, %p4107_p12 }
  0x1f   :  { %p4110_p1 = pnand %p4109_p0, %p4103_p11 }
  0x21   :  { %4113 = shalt.err (!%p4110_p1)
}
  0x22   :  { %36 = dma.hbm_to_vmem [thread:$0]  %s4604_s2, 3968, %s31_s27, [#allocation6], %s4143_s22, %s4143_s22, %s4144_s23  }
  0x23   :  { %4136 = dma.done.wait [#allocation3], 256  }
  0x24   :  { %4137 = vsyncadd [#allocation3], 4294967040 }
  0x25   :  { %4138 = dma.done.wait [#allocation6], 3968  }
  0x26   :  { %4139 = vsyncadd [#allocation6], 4294963328  ;;  %vm83_vm0 = vcmask 130048   ;;  %v43_v0 = vld [vmem:[#allocation5] sm:$0xff]  ;;  %v44_v1 = vld [vmem:[#allocation5 + $0x8] sm:$0xff]  ;;  %v4146_v10 = vmov 0.0|0.0  }
  0x27   :  { %v77_v2 = vld [vmem:[#allocation2] sm:$0xff]  ;;  %v3763_v3 = vpack.c.bf16 %v44_v1, %v43_v0  ;;  %v50_v5 = vld [vmem:[#allocation5 + $0x38] sm:$0xff]  ;;  %v51_v11 = vld [vmem:[#allocation5 + $0x40] sm:$0xff]  ;;  %vm4147_vm1 = vmmov 0   ;;  %v4148_v15 = vmov 0.0   ;;  %vm171_vm2 = vcmask 261120  }
  0x28   :  { %3375 = vmatprep.mubr.msk.f32.mxu0 %vm83_vm0, %v77_v2  ;;  %v49_v4 = vld [vmem:[#allocation5 + $0x30] sm:$0xff]  ;;  %v78_v6 = vld [vmem:[#allocation2 + $0x8] sm:$0xff]  ;;  %v52_v12 = vld [vmem:[#allocation5 + $0x48] sm:$0xff]  ;;  %s4150_s11 = smov 32   ;;  %s4151_s12 = smov 96   ;;  %vm2966_vm3 = vcmask 1041408  }
  0x29   :  { %3764 = vmatprep.subr.bf16.mxu0 %v3763_v3  ;;  %v4198_v7 = vpack.c.bf16 %v50_v5, %v49_v4  ;;  %v45_v8 = vld [vmem:[#allocation5 + $0x10] sm:$0xff]  ;;  %v46_v9 = vld [vmem:[#allocation5 + $0x18] sm:$0xff]  ;;  %v4203_v14 = vpack.c.bf16 %v52_v12, %v51_v11  ;;  %v59_v20 = vld [vmem:[#allocation5 + $0x80] sm:$0xff]  ;;  %vm3131_vm4 = vcmask 523270   ;;  %s4152_s13 = smov [#allocation7]   ;;  %vm3125_vm5 = vcmask 60416  }
  0x2a   :  { %3766 = vmatpush3.bf16.msra.mxu0 %v3763_v3  ;;  %v3767_v13 = vpack.c.bf16 %v46_v9, %v45_v8  ;;  %v57_v16 = vld [vmem:[#allocation5 + $0x70] sm:$0xff]  ;;  %v58_v17 = vld [vmem:[#allocation5 + $0x78] sm:$0xff]  ;;  %v60_v21 = vld [vmem:[#allocation5 + $0x88] sm:$0xff]  ;;  %s3139_s14 = sshll.u32 %s4152_s13, 4  ;;  %s3140_s14 = int_to_ptr.vmem [resolvable:$true] %s3139_s14 }
  0x2b   :  { %3775 = vmatprep.subr.bf16.mxu0 %v4146_v10  ;;  %v4212_v18 = vld [vmem:[%s4603_s1] sm:$0x3]  ;;  %v4214_v19 = vpack.c.bf16 %v58_v17, %v57_v16  ;;  %v4220_v22 = vpack.c.bf16 %v60_v21, %v59_v20  ;;  %v47_v23 = vld [vmem:[#allocation5 + $0x20] sm:$0xff]  ;;  %v48_v24 = vld [vmem:[#allocation5 + $0x28] sm:$0xff]  ;;  %s4149_s1 = smov 64   ;;  %s4114_s15 = scalar_lea.vmem %s3140_s14, 128 }
  0x2c   :  { %3768 = vmatprep.subr.bf16.mxu1 %v3767_v13  ;;  %v3771_v25 = vpack.c.bf16 %v48_v24, %v47_v23  ;;  %v3149_v26 = vld [vmem:[#allocation5 + $0xf0] ss:$0 sm:$0xff]  ;;  %v54_v31 = vld [vmem:[#allocation5 + $0x58] sm:$0xff]  ;;  %v55_v36 = vld [vmem:[#allocation5 + $0x60] sm:$0xff]  ;;  %p4115_p2 = scmp.ne.s32.totalorder %s3140_s14, %s4114_s15  ;;  %p4119_p3 = scmp.lt.s32.totalorder %s3140_s14, %s3140_s14 }
  0x2d   :  { %3376 = vmatmul.mubr.msk.f32.vlgmr.msra.gmra.mrb[0].mxu0 %vm83_vm0, %v78_v6  ;;  %3770 = vmatpush3.bf16.msra.mxu1 %v3767_v13  ;;  %v53_v30 = vld [vmem:[#allocation5 + $0x50] sm:$0xff]  ;;  %v56_v37 = vld [vmem:[#allocation5 + $0x68] sm:$0xff]  ;;  %v62_v41 = vld [vmem:[#allocation5 + $0x98] sm:$0xff]  ;;  %p4120_p4 = scmp.lt.s32.totalorder %s4114_s15, %s4114_s15 }
  0x2e   :  { %3777 = vmatpush3.bf16.msra.mxu0 %v4198_v7  ;;  %3397 = vmatprep.mubr.msk.f32.mxu0 %vm4147_vm1, %v4148_v15  ;;  %v4236_v34 = vpack.c.bf16 %v54_v31, %v53_v30  ;;  %v4241_v38 = vpack.c.bf16 %v56_v37, %v55_v36  ;;  %v61_v40 = vld [vmem:[#allocation5 + $0x90] sm:$0xff]  ;;  %v63_v44 = vld [vmem:[#allocation5 + $0xa0] sm:$0xff]  ;;  %v64_v45 = vld [vmem:[#allocation5 + $0xa8] sm:$0xff] }
  0x2f   :  { %3778 = vmatprep.subr.bf16.mxu0 %v4146_v10  ;;  %3772 = vmatprep.subr.bf16.mxu1 %v3771_v25  ;;  %v4247_v43 = vpack.c.bf16 %v62_v41, %v61_v40  ;;  %v4253_v46 = vpack.c.bf16 %v64_v45, %v63_v44  ;;  %v3152_v49 = vld [vmem:[#allocation5 + $0xf1] ss:$0 sm:$0xff]  ;;  %p4121_p5 = por %p4120_p4, %p4119_p3 }
  0x31   :  { %3774 = vmatpush3.bf16.msra.mxu1 %v3771_v25  ;;  %p4122_p6 = pnand %p4121_p5, %p4115_p2 }
  0x32   :  { %3780 = vmatpush3.bf16.msra.mxu0 %v4203_v14  ;;  %3781 = vmatprep.subr.bf16.mxu1 %v4146_v10 }
  0x33   :  { %3787 = vmatprep.subr.bf16.mxu0 %v4146_v10 }
  0x35   :  { %3398 = vmatmul.mubr.msk.f32.vlgmr.msra.gmra.mrb[2].mxu0 %vm171_vm2, %v4212_v18 }
  0x36   :  { %3789 = vmatpush3.bf16.msra.mxu0 %v4214_v19  ;;  %3419 = vmatprep.mubr.msk.f32.mxu0 %vm4147_vm1, %v4148_v15 }
  0x37   :  { %3790 = vmatprep.subr.bf16.mxu0 %v4146_v10 }
  0x3a   :  { %3792 = vmatpush3.bf16.msra.mxu0 %v4220_v22 }
  0x3b   :  { %3799 = vmatprep.subr.bf16.mxu0 %v4146_v10 }
  0x3d   :  { %3420 = vmatmul.mubr.msk.f32.vlgmr.msra.gmra.mrb[4].mxu0 %vm171_vm2, %v4212_v18 }
  0x3e   :  { %3801 = vmatpush3.bf16.msra.mxu0 %v4198_v7  ;;  %3441 = vmatprep.mubr.msk.f32.mxu0 %vm4147_vm1, %v4148_v15 }
  0x3f   :  { %3802 = vmatprep.subr.bf16.mxu0 %v4146_v10 }
  0x42   :  { %3804 = vmatpush3.bf16.msra.mxu0 %v4203_v14 }
  0x43   :  { %3811 = vmatprep.subr.bf16.mxu0 %v4146_v10 }
 0x100   :  { %v3377_v27 = vpop.f32.mrb[0].mxu0 }
 0x101   :  { %v162_v28 = vadd.f32 %v3377_v27, %v3149_v26  ;;  %v156_v29 = vpop.f32.mrb[1].mxu0 }
 0x102   :  { %v157_v32 = vadd.f32 %v3149_v26, %v156_v29 }
 0x103   :  { %v166_v35 = vmax.f32 %v162_v28, 0.0 }
 0x104   :  { %v165_v33 = vmax.f32 %v157_v32, 0.0 }
 0x106   :  { %3386 = vmatprep.mubr.msk.f32.mxu1 %vm171_vm2, %v165_v33 }
 0x107   :  { %3387 = vmatmul.mubr.msk.f32.vlgmr.msra.gmra.mrb[0].mxu1 %vm171_vm2, %v166_v35 }
 0x108   :  { %3783 = vmatpush3.bf16.msra.mxu1 %v4236_v34  ;;  %3408 = vmatprep.mubr.msk.f32.mxu1 %vm4147_vm1, %v4148_v15  ;;  %v323_v39 = vpop.f32.mrb[2].mxu0 }
 0x109   :  { %3784 = vmatprep.subr.bf16.mxu1 %v4146_v10  ;;  %v3399_v42 = vpop.f32.mrb[3].mxu0 }
 0x10c   :  { %3786 = vmatpush3.bf16.msra.mxu1 %v4241_v38 }
 0x10d   :  { %3793 = vmatprep.subr.bf16.mxu1 %v4146_v10 }
 0x10f   :  { %3409 = vmatmul.mubr.msk.f32.vlgmr.msra.gmra.mrb[2].mxu1 %vm171_vm2, %v4212_v18 }
 0x110   :  { %3795 = vmatpush3.bf16.msra.mxu1 %v4247_v43  ;;  %3430 = vmatprep.mubr.msk.f32.mxu1 %vm4147_vm1, %v4148_v15  ;;  %v469_v47 = vpop.f32.mrb[4].mxu0 }
 0x111   :  { %3796 = vmatprep.subr.bf16.mxu1 %v4146_v10  ;;  %v3421_v48 = vpop.f32.mrb[5].mxu0  ;;  %474 = vrot.lane.b32.xlu0 %v469_v47, %s4149_s1 }
 0x114   :  { %3798 = vmatpush3.bf16.msra.mxu1 %v4253_v46 }
 0x115   :  { %3805 = vmatprep.subr.bf16.mxu1 %v4146_v10 }
 0x117   :  { %3431 = vmatmul.mubr.msk.f32.vlgmr.msra.gmra.mrb[4].mxu1 %vm171_vm2, %v4212_v18 }
 0x118   :  { %3807 = vmatpush3.bf16.msra.mxu1 %v4236_v34  ;;  %3452 = vmatprep.mubr.msk.f32.mxu1 %vm4147_vm1, %v4148_v15 }
 0x119   :  { %3808 = vmatprep.subr.bf16.mxu1 %v4146_v10 }
 0x11c   :  { %3810 = vmatpush3.bf16.msra.mxu1 %v4241_v38 }
 0x11d   :  { %3817 = vmatprep.subr.bf16.mxu1 %v4146_v10 }
 0x183   :  { %v475_v53 = vpop.permute.xlu0 %474 }
 0x1da   :  { %v3388_v50 = vpop.f32.mrb[0].mxu1 }
 0x1db   :  { %v4269_v51 = vadd.f32 %v3388_v50, %v3152_v49  ;;  %v244_v52 = vpop.f32.mrb[1].mxu1 }
 0x1dc   :  { %v4271_v54 = vadd.f32 %v3152_v49, %v244_v52 }
 0x1de   :  { %v477_v55 = vadd.f32 %v475_v53, %v4271_v54  ;;  %v327_v61 = vadd.f32 %v323_v39, %v4271_v54 }
 0x1e0   :  { %3990 = vtanh.f32 %v477_v55  ;;  %v553_v62 = vmul.f32 0.5, %v327_v61 }
 0x1e2   :  { %v394_v56 = vpop.f32.mrb[2].mxu1  ;;  %3992 = vtanh.f32 %v553_v62 }
 0x1e3   :  { %399 = vrot.lane.b32.xlu1 %v394_v56, %s4150_s11  ;;  %v3410_v57 = vpop.f32.mrb[3].mxu1 }
 0x1ea   :  { %v3991_v58 = vpop.eup %3990  ;;  %v544_v59 = vpop.f32.mrb[4].mxu1 }
 0x1eb   :  { %568 = vrot.lane.b32.xlu0 %v3991_v58, %s4149_s1  ;;  %v3432_v60 = vpop.f32.mrb[5].mxu1 }
 0x1ec   :  { %v3993_v63 = vpop.eup %3992 }
 0x1ed   :  { %v555_v0 = vadd.f32 1.0, %v3993_v63 }
 0x1ef   :  { %549 = vrot.lane.b32.xlu0 %v544_v59, %s4151_s12  ;;  %v556_v1 = vmul.f32 0.5, %v555_v0 }
 0x255   :  { %v400_v4 = vpop.permute.xlu1 %399 }
 0x256   :  { %v402_v5 = vadd.f32 %v400_v4, %v4271_v54 }
 0x258   :  { %v557_v6 = vmul.f32 0.5, %v402_v5 }
 0x25a   :  { %3994 = vtanh.f32 %v557_v6 }
 0x25d   :  { %v569_v2 = vpop.permute.xlu0 %568 }
 0x25e   :  { %v571_v3 = vmul.f32 %v569_v2, %v556_v1 }
 0x260   :  { %573 = vrot.lane.b32.xlu1 %v571_v3, %s4150_s11 }
 0x261   :  { %v550_v20 = vpop.permute.xlu0 %549 }
 0x262   :  { %v552_v21 = vadd.f32 %v550_v20, %v4271_v54 }
 0x264   :  { %v3995_v8 = vpop.eup %3994  ;;  %v562_v23 = vmul.f32 0.5, %v552_v21 }
 0x265   :  { %v559_v9 = vadd.f32 1.0, %v3995_v8 }
 0x267   :  { %v560_v11 = vmul.f32 0.5, %v559_v9 }
 0x269   :  { %v566_v12 = vmul.f32 %v560_v11, %v4212_v18 }
 0x2d2   :  { %v574_v13 = vpop.permute.xlu1 %573 }
 0x2d3   :  { %v4281_v16 = vadd.f32 %v574_v13, %v566_v12 }
 0x2d5   :  { %3996 = vtanh.f32 %v4281_v16  ;;  %v904_v63 = vrot.slane %v4281_v16, 6 }
 0x2d6   :  { %3998 = vtanh.f32 %v562_v23 }
 0x2df   :  { %v3997_v17 = vpop.eup %3996 }
 0x2e0   :  { %579 = vrot.lane.b32.xlu1 %v3997_v17, %s4149_s1  ;;  %v3999_v24 = vpop.eup %3998 }
 0x2e1   :  { %v564_v25 = vadd.f32 1.0, %v3999_v24 }
 0x2e3   :  { %v565_v26 = vmul.f32 0.5, %v564_v25 }
 0x352   :  { %v580_v27 = vpop.permute.xlu1 %579 }
 0x353   :  { %v582_v28 = vmul.f32 %v580_v27, %v565_v26 }
 0x355   :  { %584 = vrot.lane.b32.xlu0 %v582_v28, %s4150_s11 }
 0x3c7   :  { %v585_v18 = vpop.permute.xlu0 %584 }
 0x3c8   :  { %3442 = vmatmul.mubr.msk.f32.vlgmr.msra.gmra.mrb[6].mxu0 %vm171_vm2, %v585_v18  ;;  %3453 = vmatmul.mubr.msk.f32.vlgmr.msra.gmra.mrb[6].mxu1 %vm171_vm2, %v585_v18 }
 0x3c9   :  { %3813 = vmatpush3.bf16.msra.mxu0 %v4214_v19  ;;  %3819 = vmatpush3.bf16.msra.mxu1 %v4247_v43 }
 0x3ca   :  { %3814 = vmatprep.subr.bf16.mxu0 %v4146_v10  ;;  %3820 = vmatprep.subr.bf16.mxu1 %v4146_v10 }
 0x3cb   :  { %3463 = vmatprep.mubr.msk.f32.mxu0 %vm4147_vm1, %v4148_v15  ;;  %3474 = vmatprep.mubr.msk.f32.mxu1 %vm4147_vm1, %v4148_v15 }
 0x3cd   :  { %3816 = vmatpush3.bf16.msra.mxu0 %v4220_v22  ;;  %3822 = vmatpush3.bf16.msra.mxu1 %v4253_v46 }
 0x3ce   :  { %3823 = vmatprep.subr.bf16.mxu0 %v4146_v10  ;;  %3829 = vmatprep.subr.bf16.mxu1 %v4146_v10 }
 0x3d0   :  { %3464 = vmatmul.mubr.msk.f32.vlgmr.msra.gmra.mrb[8].mxu0 %vm171_vm2, %v585_v18  ;;  %3475 = vmatmul.mubr.msk.f32.vlgmr.msra.gmra.mrb[8].mxu1 %vm171_vm2, %v585_v18 }
 0x3d1   :  { %3825 = vmatpush3.bf16.msra.mxu0 %v4198_v7  ;;  %3831 = vmatpush3.bf16.msra.mxu1 %v4236_v34 }
 0x3d2   :  { %3826 = vmatprep.subr.bf16.mxu0 %v4146_v10  ;;  %3832 = vmatprep.subr.bf16.mxu1 %v4146_v10 }
 0x3d3   :  { %3485 = vmatprep.mubr.msk.f32.mxu0 %vm4147_vm1, %v4148_v15  ;;  %3496 = vmatprep.mubr.msk.f32.mxu1 %vm4147_vm1, %v4148_v15 }
 0x3d5   :  { %3828 = vmatpush3.bf16.msra.mxu0 %v4203_v14  ;;  %3834 = vmatpush3.bf16.msra.mxu1 %v4241_v38 }
 0x3d6   :  { %3835 = vmatprep.subr.bf16.mxu0 %v4146_v10  ;;  %3841 = vmatprep.subr.bf16.mxu1 %v4146_v10 }
 0x49b   :  { %v654_v29 = vpop.f32.mrb[6].mxu0  ;;  %v728_v30 = vpop.f32.mrb[6].mxu1 }
 0x49c   :  { %v3443_v31 = vpop.f32.mrb[7].mxu0  ;;  %v3454_v32 = vpop.f32.mrb[7].mxu1  ;;  %v733_v40 = vrot.slane %v728_v30, 6  ;;  %v659_v47 = vrot.slane %v654_v29, 6 }
 0x49e   :  { %v661_v48 = vadd.f32 %v659_v47, %v4271_v54 }
 0x4a0   :  { %v890_v49 = vmul.f32 0.5, %v661_v48 }
 0x4a3   :  { %v804_v33 = vpop.f32.mrb[8].mxu0  ;;  %v880_v35 = vpop.f32.mrb[8].mxu1 }
 0x4a4   :  { %v809_v36 = vrot.slane %v804_v33, 6  ;;  %v3465_v37 = vpop.f32.mrb[9].mxu0  ;;  %v3476_v39 = vpop.f32.mrb[9].mxu1  ;;  %v885_v41 = vrot.slane %v880_v35, 6 }
 0x4a6   :  { %810 = vrot.lane.b32.xlu1 %v809_v36, %s4149_s1 }
 0x4aa   :  { %734 = vrot.lane.b32.xlu1 %v733_v40, %s4150_s11 }
 0x4ae   :  { %886 = vrot.lane.b32.xlu1 %v885_v41, %s4151_s12 }
 0x518   :  { %v811_v42 = vpop.permute.xlu1 %810 }
 0x519   :  { %v813_v44 = vadd.f32 %v811_v42, %v4271_v54 }
 0x51b   :  { %4000 = vtanh.f32 %v813_v44 }
 0x51c   :  { %4002 = vtanh.f32 %v890_v49  ;;  %v735_v57 = vpop.permute.xlu1 %734 }
 0x51d   :  { %v737_v58 = vadd.f32 %v735_v57, %v4271_v54 }
 0x51f   :  { %v894_v59 = vmul.f32 0.5, %v737_v58 }
 0x520   :  { %v887_v4 = vpop.permute.xlu1 %886 }
 0x521   :  { %4004 = vtanh.f32 %v894_v59  ;;  %v889_v5 = vadd.f32 %v887_v4, %v4271_v54 }
 0x523   :  { %v899_v6 = vmul.f32 0.5, %v889_v5 }
 0x525   :  { %v4001_v45 = vpop.eup %4000 }
 0x526   :  { %908 = vrot.lane.b32.xlu0 %v4001_v45, %s4149_s1  ;;  %v4003_v50 = vpop.eup %4002 }
 0x527   :  { %v892_v52 = vadd.f32 1.0, %v4003_v50 }
 0x529   :  { %v893_v53 = vmul.f32 0.5, %v892_v52 }
 0x52b   :  { %v4005_v60 = vpop.eup %4004 }
 0x52c   :  { %v896_v61 = vadd.f32 1.0, %v4005_v60 }
 0x52e   :  { %v897_v62 = vmul.f32 0.5, %v896_v61 }
 0x530   :  { %v906_v0 = vmul.f32 %v904_v63, %v897_v62 }
 0x598   :  { %v909_v55 = vpop.permute.xlu0 %908 }
 0x599   :  { %v911_v56 = vmul.f32 %v909_v55, %v893_v53 }
 0x59b   :  { %913 = vrot.lane.b32.xlu0 %v911_v56, %s4150_s11 }
 0x60d   :  { %v914_v1 = vpop.permute.xlu0 %913 }
 0x60e   :  { %v4324_v2 = vadd.f32 %v914_v1, %v906_v0 }
 0x610   :  { %4006 = vtanh.f32 %v4324_v2  ;;  %v1245_v53 = vrot.slane %v4324_v2, 6 }
 0x611   :  { %4008 = vtanh.f32 %v899_v6 }
 0x61a   :  { %v4007_v3 = vpop.eup %4006 }
 0x61b   :  { %919 = vrot.lane.b32.xlu0 %v4007_v3, %s4149_s1  ;;  %v4009_v8 = vpop.eup %4008 }
 0x61c   :  { %v901_v9 = vadd.f32 1.0, %v4009_v8 }
 0x61e   :  { %v902_v11 = vmul.f32 0.5, %v901_v9 }
 0x68d   :  { %v920_v12 = vpop.permute.xlu0 %919 }
 0x68e   :  { %v922_v13 = vmul.f32 %v920_v12, %v902_v11 }
 0x690   :  { %v924_v16 = vrot.slane %v922_v13, 2 }
 0x692   :  { %925 = vrot.lane.b32.xlu1 %v924_v16, %s4150_s11 }
 0x704   :  { %v926_v17 = vpop.permute.xlu1 %925 }
 0x705   :  { %3486 = vmatmul.mubr.msk.f32.vlgmr.msra.gmra.mrb[10].mxu0 %vm171_vm2, %v926_v17  ;;  %3497 = vmatmul.mubr.msk.f32.vlgmr.msra.gmra.mrb[10].mxu1 %vm171_vm2, %v926_v17 }
 0x706   :  { %3837 = vmatpush3.bf16.msra.mxu0 %v4214_v19  ;;  %3843 = vmatpush3.bf16.msra.mxu1 %v4247_v43 }
 0x707   :  { %3838 = vmatprep.subr.bf16.mxu0 %v4146_v10  ;;  %3844 = vmatprep.subr.bf16.mxu1 %v4146_v10 }
 0x708   :  { %3507 = vmatprep.mubr.msk.f32.mxu0 %vm4147_vm1, %v4148_v15  ;;  %3518 = vmatprep.mubr.msk.f32.mxu1 %vm4147_vm1, %v4148_v15 }
 0x70a   :  { %3840 = vmatpush3.bf16.msra.mxu0 %v4220_v22  ;;  %3846 = vmatpush3.bf16.msra.mxu1 %v4253_v46 }
 0x70b   :  { %3847 = vmatprep.subr.bf16.mxu0 %v4146_v10  ;;  %3853 = vmatprep.subr.bf16.mxu1 %v4146_v10 }
 0x70d   :  { %3508 = vmatmul.mubr.msk.f32.vlgmr.msra.gmra.mrb[12].mxu0 %vm171_vm2, %v926_v17  ;;  %3519 = vmatmul.mubr.msk.f32.vlgmr.msra.gmra.mrb[12].mxu1 %vm171_vm2, %v926_v17 }
 0x70e   :  { %3849 = vmatpush3.bf16.msra.mxu0 %v4198_v7  ;;  %3855 = vmatpush3.bf16.msra.mxu1 %v4236_v34 }
 0x70f   :  { %3850 = vmatprep.subr.bf16.mxu0 %v4146_v10  ;;  %3856 = vmatprep.subr.bf16.mxu1 %v4146_v10 }
 0x710   :  { %3529 = vmatprep.mubr.msk.f32.mxu0 %vm4147_vm1, %v4148_v15  ;;  %3540 = vmatprep.mubr.msk.f32.mxu1 %vm4147_vm1, %v4148_v15 }
 0x712   :  { %3852 = vmatpush3.bf16.msra.mxu0 %v4203_v14  ;;  %3858 = vmatpush3.bf16.msra.mxu1 %v4241_v38 }
 0x713   :  { %3859 = vmatprep.subr.bf16.mxu0 %v4146_v10  ;;  %3865 = vmatprep.subr.bf16.mxu1 %v4146_v10 }
 0x7d8   :  { %v995_v20 = vpop.f32.mrb[10].mxu0  ;;  %v1069_v21 = vpop.f32.mrb[10].mxu1 }
 0x7d9   :  { %v3487_v23 = vpop.f32.mrb[11].mxu0  ;;  %v3498_v24 = vpop.f32.mrb[11].mxu1  ;;  %v1074_v29 = vrot.slane %v1069_v21, 4  ;;  %v1000_v35 = vrot.slane %v995_v20, 4 }
 0x7db   :  { %v1002_v36 = vadd.f32 %v1000_v35, %v4271_v54 }
 0x7dd   :  { %v1231_v37 = vmul.f32 0.5, %v1002_v36 }
 0x7e0   :  { %v1145_v25 = vpop.f32.mrb[12].mxu0  ;;  %v1221_v26 = vpop.f32.mrb[12].mxu1 }
 0x7e1   :  { %v1150_v27 = vrot.slane %v1145_v25, 4  ;;  %v3509_v28 = vpop.f32.mrb[13].mxu0  ;;  %v3520_v18 = vpop.f32.mrb[13].mxu1  ;;  %v1226_v30 = vrot.slane %v1221_v26, 4 }
 0x7e3   :  { %1151 = vrot.lane.b32.xlu0 %v1150_v27, %s4149_s1 }
 0x7e7   :  { %1075 = vrot.lane.b32.xlu0 %v1074_v29, %s4150_s11 }
 0x7eb   :  { %1227 = vrot.lane.b32.xlu0 %v1226_v30, %s4151_s12 }
 0x855   :  { %v1152_v31 = vpop.permute.xlu0 %1151 }
 0x856   :  { %v1154_v32 = vadd.f32 %v1152_v31, %v4271_v54 }
 0x858   :  { %4010 = vtanh.f32 %v1154_v32 }
 0x859   :  { %4012 = vtanh.f32 %v1231_v37  ;;  %v1076_v45 = vpop.permute.xlu0 %1075 }
 0x85a   :  { %v1078_v47 = vadd.f32 %v1076_v45, %v4271_v54 }
 0x85c   :  { %v1235_v48 = vmul.f32 0.5, %v1078_v47 }
 0x85d   :  { %v1228_v59 = vpop.permute.xlu0 %1227 }
 0x85e   :  { %4014 = vtanh.f32 %v1235_v48  ;;  %v1230_v60 = vadd.f32 %v1228_v59, %v4271_v54 }
 0x860   :  { %v1240_v61 = vmul.f32 0.5, %v1230_v60 }
 0x862   :  { %v4011_v33 = vpop.eup %4010 }
 0x863   :  { %1249 = vrot.lane.b32.xlu1 %v4011_v33, %s4149_s1  ;;  %v4013_v39 = vpop.eup %4012 }
 0x864   :  { %v1233_v40 = vadd.f32 1.0, %v4013_v39 }
 0x866   :  { %v1234_v41 = vmul.f32 0.5, %v1233_v40 }
 0x868   :  { %v4015_v49 = vpop.eup %4014 }
 0x869   :  { %v1237_v50 = vadd.f32 1.0, %v4015_v49 }
 0x86b   :  { %v1238_v52 = vmul.f32 0.5, %v1237_v50 }
 0x86d   :  { %v1247_v55 = vmul.f32 %v1245_v53, %v1238_v52 }
 0x8d5   :  { %v1250_v42 = vpop.permute.xlu1 %1249 }
 0x8d6   :  { %v1252_v44 = vmul.f32 %v1250_v42, %v1234_v41 }
 0x8d8   :  { %1254 = vrot.lane.b32.xlu1 %v1252_v44, %s4150_s11 }
 0x94a   :  { %v1255_v56 = vpop.permute.xlu1 %1254 }
 0x94b   :  { %v4367_v57 = vadd.f32 %v1255_v56, %v1247_v55 }
 0x94d   :  { %4016 = vtanh.f32 %v4367_v57  ;;  %v1586_v41 = vrot.slane %v4367_v57, 6 }
 0x94e   :  { %4018 = vtanh.f32 %v1240_v61 }
 0x957   :  { %v4017_v58 = vpop.eup %4016 }
 0x958   :  { %1260 = vrot.lane.b32.xlu1 %v4017_v58, %s4149_s1  ;;  %v4019_v62 = vpop.eup %4018 }
 0x959   :  { %v1242_v63 = vadd.f32 1.0, %v4019_v62 }
 0x95b   :  { %v1243_v0 = vmul.f32 0.5, %v1242_v63 }
 0x9ca   :  { %v1261_v1 = vpop.permute.xlu1 %1260 }
 0x9cb   :  { %v1263_v3 = vmul.f32 %v1261_v1, %v1243_v0 }
 0x9cd   :  { %v1265_v2 = vrot.slane %v1263_v3, 4 }
 0x9cf   :  { %1266 = vrot.lane.b32.xlu0 %v1265_v2, %s4150_s11 }
 0xa41   :  { %v1267_v4 = vpop.permute.xlu0 %1266 }
 0xa42   :  { %3530 = vmatmul.mubr.msk.f32.vlgmr.msra.gmra.mrb[14].mxu0 %vm171_vm2, %v1267_v4  ;;  %3541 = vmatmul.mubr.msk.f32.vlgmr.msra.gmra.mrb[14].mxu1 %vm171_vm2, %v1267_v4 }
 0xa43   :  { %3861 = vmatpush3.bf16.msra.mxu0 %v4214_v19  ;;  %3867 = vmatpush3.bf16.msra.mxu1 %v4247_v43 }
 0xa44   :  { %3862 = vmatprep.subr.bf16.mxu0 %v4146_v10  ;;  %3868 = vmatprep.subr.bf16.mxu1 %v4146_v10 }
 0xa45   :  { %3551 = vmatprep.mubr.msk.f32.mxu0 %vm4147_vm1, %v4148_v15  ;;  %3562 = vmatprep.mubr.msk.f32.mxu1 %vm4147_vm1, %v4148_v15 }
 0xa47   :  { %3864 = vmatpush3.bf16.msra.mxu0 %v4220_v22  ;;  %3870 = vmatpush3.bf16.msra.mxu1 %v4253_v46 }
 0xa48   :  { %3871 = vmatprep.subr.bf16.mxu0 %v4146_v10  ;;  %3877 = vmatprep.subr.bf16.mxu1 %v4146_v10 }
 0xa4a   :  { %3552 = vmatmul.mubr.msk.f32.vlgmr.msra.gmra.mrb[16].mxu0 %vm171_vm2, %v1267_v4  ;;  %3563 = vmatmul.mubr.msk.f32.vlgmr.msra.gmra.mrb[16].mxu1 %vm171_vm2, %v1267_v4 }
 0xa4b   :  { %3873 = vmatpush3.bf16.msra.mxu0 %v4198_v7  ;;  %3879 = vmatpush3.bf16.msra.mxu1 %v4236_v34 }
 0xa4c   :  { %3874 = vmatprep.subr.bf16.mxu0 %v4146_v10  ;;  %3880 = vmatprep.subr.bf16.mxu1 %v4146_v10 }
 0xa4d   :  { %3573 = vmatprep.mubr.msk.f32.mxu0 %vm4147_vm1, %v4148_v15  ;;  %3584 = vmatprep.mubr.msk.f32.mxu1 %vm4147_vm1, %v4148_v15 }
 0xa4f   :  { %3876 = vmatpush3.bf16.msra.mxu0 %v4203_v14  ;;  %3882 = vmatpush3.bf16.msra.mxu1 %v4241_v38 }
 0xa50   :  { %3883 = vmatprep.subr.bf16.mxu0 %v4146_v10  ;;  %3889 = vmatprep.subr.bf16.mxu1 %v4146_v10 }
 0xb15   :  { %v1336_v5 = vpop.f32.mrb[14].mxu0  ;;  %v1410_v6 = vpop.f32.mrb[14].mxu1 }
 0xb16   :  { %v3531_v8 = vpop.f32.mrb[15].mxu0  ;;  %v3542_v9 = vpop.f32.mrb[15].mxu1  ;;  %v1415_v20 = vrot.slane %v1410_v6, 2  ;;  %v1341_v26 = vrot.slane %v1336_v5, 2 }
 0xb18   :  { %v1343_v27 = vadd.f32 %v1341_v26, %v4271_v54 }
 0xb1a   :  { %v1572_v28 = vmul.f32 0.5, %v1343_v27 }
 0xb1d   :  { %v1486_v11 = vpop.f32.mrb[16].mxu0  ;;  %v1562_v12 = vpop.f32.mrb[16].mxu1 }
 0xb1e   :  { %v1491_v13 = vrot.slane %v1486_v11, 2  ;;  %v3553_v16 = vpop.f32.mrb[17].mxu0  ;;  %v3564_v17 = vpop.f32.mrb[17].mxu1  ;;  %v1567_v21 = vrot.slane %v1562_v12, 2 }
 0xb20   :  { %1492 = vrot.lane.b32.xlu1 %v1491_v13, %s4149_s1 }
 0xb24   :  { %1416 = vrot.lane.b32.xlu1 %v1415_v20, %s4150_s11 }
 0xb28   :  { %1568 = vrot.lane.b32.xlu1 %v1567_v21, %s4151_s12 }
 0xb92   :  { %v1493_v23 = vpop.permute.xlu1 %1492 }
 0xb93   :  { %v1495_v24 = vadd.f32 %v1493_v23, %v4271_v54 }
 0xb95   :  { %4020 = vtanh.f32 %v1495_v24 }
 0xb96   :  { %4022 = vtanh.f32 %v1572_v28  ;;  %v1417_v33 = vpop.permute.xlu1 %1416 }
 0xb97   :  { %v1419_v35 = vadd.f32 %v1417_v33, %v4271_v54 }
 0xb99   :  { %v1576_v36 = vmul.f32 0.5, %v1419_v35 }
 0xb9a   :  { %v1569_v48 = vpop.permute.xlu1 %1568 }
 0xb9b   :  { %4024 = vtanh.f32 %v1576_v36  ;;  %v1571_v49 = vadd.f32 %v1569_v48, %v4271_v54 }
 0xb9d   :  { %v1581_v50 = vmul.f32 0.5, %v1571_v49 }
 0xb9f   :  { %v4021_v25 = vpop.eup %4020 }
 0xba0   :  { %1590 = vrot.lane.b32.xlu0 %v4021_v25, %s4149_s1  ;;  %v4023_v18 = vpop.eup %4022 }
 0xba1   :  { %v1574_v29 = vadd.f32 1.0, %v4023_v18 }
 0xba3   :  { %v1575_v30 = vmul.f32 0.5, %v1574_v29 }
 0xba5   :  { %v4025_v37 = vpop.eup %4024 }
 0xba6   :  { %v1578_v39 = vadd.f32 1.0, %v4025_v37 }
 0xba8   :  { %v1579_v40 = vmul.f32 0.5, %v1578_v39 }
 0xbaa   :  { %v1588_v42 = vmul.f32 %v1586_v41, %v1579_v40 }
 0xc12   :  { %v1591_v31 = vpop.permute.xlu0 %1590 }
 0xc13   :  { %v1593_v32 = vmul.f32 %v1591_v31, %v1575_v30 }
 0xc15   :  { %1595 = vrot.lane.b32.xlu0 %v1593_v32, %s4150_s11 }
 0xc87   :  { %v1596_v44 = vpop.permute.xlu0 %1595 }
 0xc88   :  { %v4410_v45 = vadd.f32 %v1596_v44, %v1588_v42 }
 0xc8a   :  { %4026 = vtanh.f32 %v4410_v45  ;;  %v1921_v26 = vrot.slane %v4410_v45, 6 }
 0xc8b   :  { %4028 = vtanh.f32 %v1581_v50 }
 0xc94   :  { %v4027_v47 = vpop.eup %4026 }
 0xc95   :  { %1601 = vrot.lane.b32.xlu0 %v4027_v47, %s4149_s1  ;;  %v4029_v52 = vpop.eup %4028 }
 0xc96   :  { %v1583_v53 = vadd.f32 1.0, %v4029_v52 }
 0xc98   :  { %v1584_v55 = vmul.f32 0.5, %v1583_v53 }
 0xd07   :  { %v1602_v56 = vpop.permute.xlu0 %1601 }
 0xd08   :  { %v1604_v58 = vmul.f32 %v1602_v56, %v1584_v55 }
 0xd0a   :  { %v1606_v57 = vrot.slane %v1604_v58, 6 }
 0xd0c   :  { %1607 = vrot.lane.b32.xlu1 %v1606_v57, %s4150_s11 }
 0xd7e   :  { %v1608_v59 = vpop.permute.xlu1 %1607 }
 0xd7f   :  { %3574 = vmatmul.mubr.msk.f32.vlgmr.msra.gmra.mrb[18].mxu0 %vm171_vm2, %v1608_v59  ;;  %3585 = vmatmul.mubr.msk.f32.vlgmr.msra.gmra.mrb[18].mxu1 %vm171_vm2, %v1608_v59 }
 0xd80   :  { %3885 = vmatpush3.bf16.msra.mxu0 %v4214_v19  ;;  %3891 = vmatpush3.bf16.msra.mxu1 %v4247_v43 }
 0xd81   :  { %3886 = vmatprep.subr.bf16.mxu0 %v4146_v10  ;;  %3892 = vmatprep.subr.bf16.mxu1 %v4146_v10 }
 0xd82   :  { %3595 = vmatprep.mubr.msk.f32.mxu0 %vm4147_vm1, %v4148_v15  ;;  %3606 = vmatprep.mubr.msk.f32.mxu1 %vm4147_vm1, %v4148_v15 }
 0xd84   :  { %3888 = vmatpush3.bf16.msra.mxu0 %v4220_v22  ;;  %3894 = vmatpush3.bf16.msra.mxu1 %v4253_v46 }
 0xd85   :  { %3895 = vmatprep.subr.bf16.mxu0 %v4146_v10  ;;  %3901 = vmatprep.subr.bf16.mxu1 %v4146_v10 }
 0xd87   :  { %3596 = vmatmul.mubr.msk.f32.vlgmr.msra.gmra.mrb[20].mxu0 %vm171_vm2, %v1608_v59  ;;  %3607 = vmatmul.mubr.msk.f32.vlgmr.msra.gmra.mrb[20].mxu1 %vm171_vm2, %v1608_v59 }
 0xd88   :  { %3897 = vmatpush3.bf16.msra.mxu0 %v4198_v7  ;;  %3903 = vmatpush3.bf16.msra.mxu1 %v4236_v34 }
 0xd89   :  { %3898 = vmatprep.subr.bf16.mxu0 %v4146_v10  ;;  %3904 = vmatprep.subr.bf16.mxu1 %v4146_v10 }
 0xd8a   :  { %3617 = vmatprep.mubr.msk.f32.mxu0 %vm4147_vm1, %v4148_v15  ;;  %3628 = vmatprep.mubr.msk.f32.mxu1 %vm4147_vm1, %v4148_v15 }
 0xd8c   :  { %3900 = vmatpush3.bf16.msra.mxu0 %v4203_v14  ;;  %3906 = vmatpush3.bf16.msra.mxu1 %v4241_v38 }
 0xd8d   :  { %3907 = vmatprep.subr.bf16.mxu0 %v4146_v10  ;;  %3913 = vmatprep.subr.bf16.mxu1 %v4146_v10 }
 0xe52   :  { %v1677_v54 = vpop.f32.mrb[18].mxu0  ;;  %v1748_v60 = vpop.f32.mrb[18].mxu1 }
 0xe53   :  { %v3575_v61 = vpop.f32.mrb[19].mxu0  ;;  %v3586_v62 = vpop.f32.mrb[19].mxu1  ;;  %v1681_v6 = vadd.f32 %v1677_v54, %v4269_v51 }
 0xe55   :  { %v1907_v8 = vmul.f32 0.5, %v1681_v6 }
 0xe5a   :  { %v1823_v63 = vpop.f32.mrb[20].mxu0  ;;  %v1898_v0 = vpop.f32.mrb[20].mxu1 }
 0xe5b   :  { %v3608_v1 = vpop.f32.mrb[21].mxu1  ;;  %1828 = vrot.lane.b32.xlu0 %v1823_v63, %s4149_s1  ;;  %v3597_v3 = vpop.f32.mrb[21].mxu0 }
 0xe5f   :  { %1753 = vrot.lane.b32.xlu0 %v1748_v60, %s4150_s11 }
 0xe63   :  { %1903 = vrot.lane.b32.xlu0 %v1898_v0, %s4151_s12 }
 0xecd   :  { %v1829_v2 = vpop.permute.xlu0 %1828 }
 0xece   :  { %v1831_v4 = vadd.f32 %v1829_v2, %v4269_v51 }
 0xed0   :  { %4030 = vtanh.f32 %v1831_v4 }
 0xed1   :  { %4032 = vtanh.f32 %v1907_v8  ;;  %v1754_v17 = vpop.permute.xlu0 %1753 }
 0xed2   :  { %v1756_v20 = vadd.f32 %v1754_v17, %v4269_v51 }
 0xed4   :  { %v1911_v21 = vmul.f32 0.5, %v1756_v20 }
 0xed5   :  { %v1904_v30 = vpop.permute.xlu0 %1903 }
 0xed6   :  { %4034 = vtanh.f32 %v1911_v21  ;;  %v1906_v31 = vadd.f32 %v1904_v30, %v4269_v51 }
 0xed8   :  { %v1916_v32 = vmul.f32 0.5, %v1906_v31 }
 0xeda   :  { %v4031_v5 = vpop.eup %4030 }
 0xedb   :  { %1925 = vrot.lane.b32.xlu1 %v4031_v5, %s4149_s1  ;;  %v4033_v9 = vpop.eup %4032 }
 0xedc   :  { %v1909_v11 = vadd.f32 1.0, %v4033_v9 }
 0xede   :  { %v1910_v12 = vmul.f32 0.5, %v1909_v11 }
 0xee0   :  { %v4035_v23 = vpop.eup %4034 }
 0xee1   :  { %v1913_v24 = vadd.f32 1.0, %v4035_v23 }
 0xee3   :  { %v1914_v25 = vmul.f32 0.5, %v1913_v24 }
 0xee5   :  { %v1923_v27 = vmul.f32 %v1921_v26, %v1914_v25 }
 0xf4d   :  { %v1926_v13 = vpop.permute.xlu1 %1925 }
 0xf4e   :  { %v1928_v16 = vmul.f32 %v1926_v13, %v1910_v12 }
 0xf50   :  { %1930 = vrot.lane.b32.xlu1 %v1928_v16, %s4150_s11 }
 0xfc2   :  { %v1931_v28 = vpop.permute.xlu1 %1930 }
 0xfc3   :  { %v4453_v18 = vadd.f32 %v1931_v28, %v1923_v27 }
 0xfc5   :  { %4036 = vtanh.f32 %v4453_v18  ;;  %v2261_v9 = vrot.slane %v4453_v18, 6 }
 0xfc6   :  { %4038 = vtanh.f32 %v1916_v32 }
 0xfcf   :  { %v4037_v29 = vpop.eup %4036 }
 0xfd0   :  { %1936 = vrot.lane.b32.xlu1 %v4037_v29, %s4149_s1  ;;  %v4039_v33 = vpop.eup %4038 }
 0xfd1   :  { %v1918_v35 = vadd.f32 1.0, %v4039_v33 }
 0xfd3   :  { %v1919_v36 = vmul.f32 0.5, %v1918_v35 }
0x1042   :  { %v1937_v37 = vpop.permute.xlu1 %1936 }
0x1043   :  { %v1939_v39 = vmul.f32 %v1937_v37, %v1919_v36 }
0x1045   :  { %1941 = vrot.lane.b32.xlu0 %v1939_v39, %s4150_s11 }
0x10b7   :  { %v1942_v40 = vpop.permute.xlu0 %1941 }
0x10b8   :  { %3618 = vmatmul.mubr.msk.f32.vlgmr.msra.gmra.mrb[22].mxu0 %vm171_vm2, %v1942_v40  ;;  %3629 = vmatmul.mubr.msk.f32.vlgmr.msra.gmra.mrb[22].mxu1 %vm171_vm2, %v1942_v40 }
0x10b9   :  { %3909 = vmatpush3.bf16.msra.mxu0 %v4214_v19  ;;  %3915 = vmatpush3.bf16.msra.mxu1 %v4247_v43 }
0x10ba   :  { %3910 = vmatprep.subr.bf16.mxu0 %v4146_v10  ;;  %3916 = vmatprep.subr.bf16.mxu1 %v4146_v10 }
0x10bb   :  { %3639 = vmatprep.mubr.msk.f32.mxu0 %vm4147_vm1, %v4148_v15  ;;  %3650 = vmatprep.mubr.msk.f32.mxu1 %vm4147_vm1, %v4148_v15 }
0x10bd   :  { %3912 = vmatpush3.bf16.msra.mxu0 %v4220_v22  ;;  %3918 = vmatpush3.bf16.msra.mxu1 %v4253_v46 }
0x10be   :  { %3919 = vmatprep.subr.bf16.mxu0 %v4146_v10  ;;  %3925 = vmatprep.subr.bf16.mxu1 %v4146_v10 }
0x10c0   :  { %3640 = vmatmul.mubr.msk.f32.vlgmr.msra.gmra.mrb[24].mxu0 %vm171_vm2, %v1942_v40  ;;  %3651 = vmatmul.mubr.msk.f32.vlgmr.msra.gmra.mrb[24].mxu1 %vm171_vm2, %v1942_v40 }
0x10c1   :  { %3921 = vmatpush3.bf16.msra.mxu0 %v4198_v7  ;;  %3927 = vmatpush3.bf16.msra.mxu1 %v4236_v34 }
0x10c2   :  { %3922 = vmatprep.subr.bf16.mxu0 %v4146_v10  ;;  %3928 = vmatprep.subr.bf16.mxu1 %v4146_v10 }
0x10c3   :  { %3661 = vmatprep.mubr.msk.f32.mxu0 %vm4147_vm1, %v4148_v15  ;;  %3672 = vmatprep.mubr.msk.f32.mxu1 %vm4147_vm1, %v4148_v15 }
0x10c5   :  { %3924 = vmatpush3.bf16.msra.mxu0 %v4203_v14  ;;  %3930 = vmatpush3.bf16.msra.mxu1 %v4241_v38 }
0x10c6   :  { %3931 = vmatprep.subr.bf16.mxu0 %v4146_v10  ;;  %3937 = vmatprep.subr.bf16.mxu1 %v4146_v10 }
0x118b   :  { %v2011_v41 = vpop.f32.mrb[22].mxu0  ;;  %v2085_v42 = vpop.f32.mrb[22].mxu1 }
0x118c   :  { %v3619_v44 = vpop.f32.mrb[23].mxu0  ;;  %v3630_v45 = vpop.f32.mrb[23].mxu1  ;;  %v2090_v53 = vrot.slane %v2085_v42, 6  ;;  %v2016_v59 = vrot.slane %v2011_v41, 6 }
0x118e   :  { %v2018_v54 = vadd.f32 %v2016_v59, %v4269_v51 }
0x1190   :  { %v2247_v60 = vmul.f32 0.5, %v2018_v54 }
0x1193   :  { %v2161_v47 = vpop.f32.mrb[24].mxu0  ;;  %v2237_v48 = vpop.f32.mrb[24].mxu1 }
0x1194   :  { %v2166_v49 = vrot.slane %v2161_v47, 6  ;;  %v3641_v50 = vpop.f32.mrb[25].mxu0  ;;  %v3652_v52 = vpop.f32.mrb[25].mxu1  ;;  %v2242_v55 = vrot.slane %v2237_v48, 6 }
0x1196   :  { %2167 = vrot.lane.b32.xlu1 %v2166_v49, %s4149_s1 }
0x119a   :  { %2091 = vrot.lane.b32.xlu1 %v2090_v53, %s4150_s11 }
0x119e   :  { %2243 = vrot.lane.b32.xlu1 %v2242_v55, %s4151_s12 }
0x1208   :  { %v2168_v56 = vpop.permute.xlu1 %2167 }
0x1209   :  { %v2170_v58 = vadd.f32 %v2168_v56, %v4269_v51 }
0x120b   :  { %4040 = vtanh.f32 %v2170_v58 }
0x120c   :  { %4042 = vtanh.f32 %v2247_v60  ;;  %v2092_v3 = vpop.permute.xlu1 %2091 }
0x120d   :  { %v2094_v2 = vadd.f32 %v2092_v3, %v4269_v51 }
0x120f   :  { %v2251_v4 = vmul.f32 0.5, %v2094_v2 }
0x1210   :  { %v2244_v17 = vpop.permute.xlu1 %2243 }
0x1211   :  { %4044 = vtanh.f32 %v2251_v4  ;;  %v2246_v20 = vadd.f32 %v2244_v17, %v4269_v51 }
0x1213   :  { %v2256_v21 = vmul.f32 0.5, %v2246_v20 }
0x1215   :  { %v4041_v57 = vpop.eup %4040 }
0x1216   :  { %2265 = vrot.lane.b32.xlu0 %v4041_v57, %s4149_s1  ;;  %v4043_v61 = vpop.eup %4042 }
0x1217   :  { %v2249_v62 = vadd.f32 1.0, %v4043_v61 }
0x1219   :  { %v2250_v63 = vmul.f32 0.5, %v2249_v62 }
0x121b   :  { %v4045_v5 = vpop.eup %4044 }
0x121c   :  { %v2253_v6 = vadd.f32 1.0, %v4045_v5 }
0x121e   :  { %v2254_v8 = vmul.f32 0.5, %v2253_v6 }
0x1220   :  { %v2263_v11 = vmul.f32 %v2261_v9, %v2254_v8 }
0x1288   :  { %v2266_v0 = vpop.permute.xlu0 %2265 }
0x1289   :  { %v2268_v1 = vmul.f32 %v2266_v0, %v2250_v63 }
0x128b   :  { %2270 = vrot.lane.b32.xlu0 %v2268_v1, %s4150_s11 }
0x12fd   :  { %v2271_v12 = vpop.permute.xlu0 %2270 }
0x12fe   :  { %v4496_v13 = vadd.f32 %v2271_v12, %v2263_v11 }
0x1300   :  { %4046 = vtanh.f32 %v4496_v13  ;;  %v2602_v59 = vrot.slane %v4496_v13, 6 }
0x1301   :  { %4048 = vtanh.f32 %v2256_v21 }
0x130a   :  { %v4047_v16 = vpop.eup %4046 }
0x130b   :  { %2276 = vrot.lane.b32.xlu0 %v4047_v16, %s4149_s1  ;;  %v4049_v23 = vpop.eup %4048 }
0x130c   :  { %v2258_v24 = vadd.f32 1.0, %v4049_v23 }
0x130e   :  { %v2259_v25 = vmul.f32 0.5, %v2258_v24 }
0x137d   :  { %v2277_v26 = vpop.permute.xlu0 %2276 }
0x137e   :  { %v2279_v27 = vmul.f32 %v2277_v26, %v2259_v25 }
0x1380   :  { %v2281_v28 = vrot.slane %v2279_v27, 2 }
0x1382   :  { %2282 = vrot.lane.b32.xlu1 %v2281_v28, %s4150_s11 }
0x13f4   :  { %v2283_v18 = vpop.permute.xlu1 %2282 }
0x13f5   :  { %3662 = vmatmul.mubr.msk.f32.vlgmr.msra.gmra.mrb[26].mxu0 %vm171_vm2, %v2283_v18  ;;  %3673 = vmatmul.mubr.msk.f32.vlgmr.msra.gmra.mrb[26].mxu1 %vm171_vm2, %v2283_v18 }
0x13f6   :  { %3933 = vmatpush3.bf16.msra.mxu0 %v4214_v19  ;;  %3939 = vmatpush3.bf16.msra.mxu1 %v4247_v43 }
0x13f7   :  { %3934 = vmatprep.subr.bf16.mxu0 %v4146_v10  ;;  %3940 = vmatprep.subr.bf16.mxu1 %v4146_v10 }
0x13f8   :  { %3683 = vmatprep.mubr.msk.f32.mxu0 %vm4147_vm1, %v4148_v15  ;;  %3694 = vmatprep.mubr.msk.f32.mxu1 %vm4147_vm1, %v4148_v15 }
0x13fa   :  { %3936 = vmatpush3.bf16.msra.mxu0 %v4220_v22  ;;  %3942 = vmatpush3.bf16.msra.mxu1 %v4253_v46 }
0x13fb   :  { %3943 = vmatprep.subr.bf16.mxu0 %v4146_v10  ;;  %3949 = vmatprep.subr.bf16.mxu1 %v4146_v10 }
0x13fd   :  { %3684 = vmatmul.mubr.msk.f32.vlgmr.msra.gmra.mrb[28].mxu0 %vm171_vm2, %v2283_v18  ;;  %3695 = vmatmul.mubr.msk.f32.vlgmr.msra.gmra.mrb[28].mxu1 %vm171_vm2, %v2283_v18 }
0x13fe   :  { %3945 = vmatpush3.bf16.msra.mxu0 %v4198_v7  ;;  %3951 = vmatpush3.bf16.msra.mxu1 %v4236_v34 }
0x13ff   :  { %3946 = vmatprep.subr.bf16.mxu0 %v4146_v10  ;;  %3952 = vmatprep.subr.bf16.mxu1 %v4146_v10 }
0x1400   :  { %3705 = vmatprep.mubr.msk.f32.mxu0 %vm4147_vm1, %v4148_v15  ;;  %3716 = vmatprep.mubr.msk.f32.mxu1 %vm4147_vm1, %v4148_v15 }
0x1402   :  { %3948 = vmatpush3.bf16.msra.mxu0 %v4203_v14  ;;  %3954 = vmatpush3.bf16.msra.mxu1 %v4241_v38 }
0x1403   :  { %3955 = vmatprep.subr.bf16.mxu0 %v4146_v10  ;;  %3961 = vmatprep.subr.bf16.mxu1 %v4146_v10 }
0x14c8   :  { %v2352_v7 = vpop.f32.mrb[26].mxu0  ;;  %v2426_v34 = vpop.f32.mrb[26].mxu1 }
0x14c9   :  { %v3663_v29 = vpop.f32.mrb[27].mxu0  ;;  %v3674_v30 = vpop.f32.mrb[27].mxu1  ;;  %v2431_v37 = vrot.slane %v2426_v34, 4  ;;  %v2357_v41 = vrot.slane %v2352_v7, 4 }
0x14cb   :  { %v2359_v42 = vadd.f32 %v2357_v41, %v4269_v51  ;;  %v66_v41 = vld [vmem:[#allocation5 + $0xb8] sm:$0xff] }
0x14cd   :  { %v2588_v44 = vmul.f32 0.5, %v2359_v42 }
0x14d0   :  { %v2502_v31 = vpop.f32.mrb[28].mxu0  ;;  %v2578_v32 = vpop.f32.mrb[28].mxu1 }
0x14d1   :  { %v2507_v33 = vrot.slane %v2502_v31, 4  ;;  %v3685_v35 = vpop.f32.mrb[29].mxu0  ;;  %v3696_v36 = vpop.f32.mrb[29].mxu1  ;;  %v2583_v14 = vrot.slane %v2578_v32, 4 }
0x14d3   :  { %2508 = vrot.lane.b32.xlu0 %v2507_v33, %s4149_s1 }
0x14d7   :  { %2432 = vrot.lane.b32.xlu0 %v2431_v37, %s4150_s11 }
0x14db   :  { %2584 = vrot.lane.b32.xlu0 %v2583_v14, %s4151_s12 }
0x1545   :  { %v2509_v38 = vpop.permute.xlu0 %2508 }
0x1546   :  { %v2511_v39 = vadd.f32 %v2509_v38, %v4269_v51 }
0x1548   :  { %4050 = vtanh.f32 %v2511_v39 }
0x1549   :  { %4052 = vtanh.f32 %v2588_v44  ;;  %v2433_v52 = vpop.permute.xlu0 %2432 }
0x154a   :  { %v2435_v53 = vadd.f32 %v2433_v52, %v4269_v51 }
0x154c   :  { %v2592_v55 = vmul.f32 0.5, %v2435_v53 }
0x154d   :  { %v2585_v63 = vpop.permute.xlu0 %2584 }
0x154e   :  { %4054 = vtanh.f32 %v2592_v55  ;;  %v2587_v0 = vadd.f32 %v2585_v63, %v4269_v51  ;;  %v69_v55 = vld [vmem:[#allocation5 + $0xd0] sm:$0xff] }
0x1550   :  { %v2597_v1 = vmul.f32 0.5, %v2587_v0 }
0x1552   :  { %v4051_v40 = vpop.eup %4050 }
0x1553   :  { %2606 = vrot.lane.b32.xlu1 %v4051_v40, %s4149_s1  ;;  %v4053_v45 = vpop.eup %4052  ;;  %v65_v40 = vld [vmem:[#allocation5 + $0xb0] sm:$0xff] }
0x1554   :  { %v2590_v47 = vadd.f32 1.0, %v4053_v45  ;;  %v3968_v42 = vpack.c.bf16 %v66_v41, %v65_v40 }
0x1556   :  { %v2591_v48 = vmul.f32 0.5, %v2590_v47 }
0x1558   :  { %v4055_v56 = vpop.eup %4054 }
0x1559   :  { %v2594_v58 = vadd.f32 1.0, %v4055_v56  ;;  %v70_v56 = vld [vmem:[#allocation5 + $0xd8] sm:$0xff] }
0x155b   :  { %v2595_v57 = vmul.f32 0.5, %v2594_v58  ;;  %v3974_v58 = vpack.c.bf16 %v70_v56, %v69_v55 }
0x155d   :  { %v2604_v54 = vmul.f32 %v2602_v59, %v2595_v57 }
0x15c5   :  { %v2607_v49 = vpop.permute.xlu1 %2606 }
0x15c6   :  { %v2609_v50 = vmul.f32 %v2607_v49, %v2591_v48  ;;  %v67_v49 = vld [vmem:[#allocation5 + $0xc0] sm:$0xff] }
0x15c8   :  { %2611 = vrot.lane.b32.xlu1 %v2609_v50, %s4150_s11  ;;  %v68_v50 = vld [vmem:[#allocation5 + $0xc8] sm:$0xff] }
0x15c9   :  { %v3971_v52 = vpack.c.bf16 %v68_v50, %v67_v49 }
0x163a   :  { %v2612_v60 = vpop.permute.xlu1 %2611 }
0x163b   :  { %v4539_v61 = vadd.f32 %v2612_v60, %v2604_v54 }
0x163d   :  { %4056 = vtanh.f32 %v4539_v61  ;;  %v2943_v37 = vrot.slane %v4539_v61, 6 }
0x163e   :  { %4058 = vtanh.f32 %v2597_v1  ;;  %v72_v1 = vld [vmem:[#allocation5 + $0xe8] sm:$0xff] }
0x1647   :  { %v4057_v62 = vpop.eup %4056 }
0x1648   :  { %2617 = vrot.lane.b32.xlu1 %v4057_v62, %s4149_s1  ;;  %v4059_v3 = vpop.eup %4058 }
0x1649   :  { %v2599_v2 = vadd.f32 1.0, %v4059_v3 }
0x164b   :  { %v2600_v4 = vmul.f32 0.5, %v2599_v2  ;;  %v3187_v2 = vld [vmem:[#allocation5 + $0xf2] ss:$0 sm:$0xff] }
0x16ba   :  { %v2618_v5 = vpop.permute.xlu1 %2617 }
0x16bb   :  { %v4544_v6 = vmul.f32 %v2618_v5, %v2600_v4 }
0x16bd   :  { %v2622_v8 = vrot.slane %v4544_v6, 4 }
0x16bf   :  { %2623 = vrot.lane.b32.xlu0 %v2622_v8, %s4150_s11 }
0x1731   :  { %v2624_v9 = vpop.permute.xlu0 %2623 }
0x1732   :  { %3706 = vmatmul.mubr.msk.f32.vlgmr.msra.gmra.mrb[30].mxu0 %vm171_vm2, %v2624_v9  ;;  %3717 = vmatmul.mubr.msk.f32.vlgmr.msra.gmra.mrb[30].mxu1 %vm171_vm2, %v2624_v9 }
0x1733   :  { %3957 = vmatpush3.bf16.msra.mxu0 %v4214_v19  ;;  %3963 = vmatpush3.bf16.msra.mxu1 %v4247_v43 }
0x1734   :  { %3958 = vmatprep.subr.bf16.mxu0 %v4146_v10  ;;  %3964 = vmatprep.subr.bf16.mxu1 %v4146_v10 }
0x1735   :  { %3727 = vmatprep.mubr.msk.f32.mxu0 %vm4147_vm1, %v4148_v15  ;;  %3738 = vmatprep.mubr.msk.f32.mxu1 %vm4147_vm1, %v4148_v15 }
0x1737   :  { %3960 = vmatpush3.bf16.msra.mxu0 %v4220_v22  ;;  %3966 = vmatpush3.bf16.msra.mxu1 %v4253_v46 }
0x1738   :  { %3967 = vmatprep.subr.bf16.mxu0 %v4146_v10  ;;  %3973 = vmatprep.subr.bf16.mxu1 %v4146_v10 }
0x173a   :  { %3728 = vmatmul.mubr.msk.f32.vlgmr.msra.gmra.mrb[32].mxu0 %vm171_vm2, %v2624_v9  ;;  %3739 = vmatmul.mubr.msk.f32.vlgmr.msra.gmra.mrb[32].mxu1 %vm171_vm2, %v2624_v9 }
0x173b   :  { %3749 = vmatprep.mubr.msk.f32.mxu0 %vm4147_vm1, %v4148_v15  ;;  %3760 = vmatprep.mubr.msk.f32.mxu1 %vm4147_vm1, %v4148_v15 }
0x173c   :  { %3969 = vmatpush3.bf16.msra.mxu0 %v3968_v42  ;;  %3975 = vmatpush3.bf16.msra.mxu1 %v3974_v58 }
0x173d   :  { %3970 = vmatprep.subr.bf16.mxu0 %v4146_v10  ;;  %3976 = vmatprep.subr.bf16.mxu1 %v4146_v10  ;;  %v71_v10 = vld [vmem:[#allocation5 + $0xe0] sm:$0xff] }
0x173e   :  { %v3977_v3 = vpack.c.bf16 %v72_v1, %v71_v10 }
0x1740   :  { %3972 = vmatpush3.bf16.msra.mxu0 %v3971_v52  ;;  %3978 = vmatpush3.bf16.msra.mxu1 %v3977_v3 }
0x1805   :  { %v2693_v19 = vpop.f32.mrb[30].mxu0  ;;  %v2767_v43 = vpop.f32.mrb[30].mxu1 }
0x1806   :  { %v3707_v11 = vpop.f32.mrb[31].mxu0  ;;  %v3718_v22 = vpop.f32.mrb[31].mxu1  ;;  %v2772_v20 = vrot.slane %v2767_v43, 2  ;;  %v2698_v25 = vrot.slane %v2693_v19, 2 }
0x1808   :  { %v2700_v26 = vadd.f32 %v2698_v25, %v4269_v51 }
0x180a   :  { %v2929_v27 = vmul.f32 0.5, %v2700_v26 }
0x180d   :  { %v2843_v12 = vpop.f32.mrb[32].mxu0  ;;  %v2919_v46 = vpop.f32.mrb[32].mxu1 }
0x180e   :  { %v2848_v13 = vrot.slane %v2843_v12, 2  ;;  %v3729_v16 = vpop.f32.mrb[33].mxu0  ;;  %v3740_v17 = vpop.f32.mrb[33].mxu1  ;;  %v2924_v21 = vrot.slane %v2919_v46, 2 }
0x1810   :  { %2849 = vrot.lane.b32.xlu1 %v2848_v13, %s4149_s1 }
0x1814   :  { %2773 = vrot.lane.b32.xlu1 %v2772_v20, %s4150_s11 }
0x1818   :  { %2925 = vrot.lane.b32.xlu1 %v2924_v21, %s4151_s12 }
0x1882   :  { %v2850_v23 = vpop.permute.xlu1 %2849 }
0x1883   :  { %v2852_v15 = vadd.f32 %v2850_v23, %v4269_v51 }
0x1885   :  { %4060 = vtanh.f32 %v2852_v15 }
0x1886   :  { %4062 = vtanh.f32 %v2929_v27  ;;  %v2774_v30 = vpop.permute.xlu1 %2773 }
0x1887   :  { %v2776_v31 = vadd.f32 %v2774_v30, %v4269_v51 }
0x1889   :  { %v2933_v32 = vmul.f32 0.5, %v2776_v31 }
0x188a   :  { %v2926_v45 = vpop.permute.xlu1 %2925 }
0x188b   :  { %4064 = vtanh.f32 %v2933_v32  ;;  %v2928_v47 = vadd.f32 %v2926_v45, %v4269_v51 }
0x188d   :  { %v2938_v48 = vmul.f32 0.5, %v2928_v47 }
0x188f   :  { %v4061_v24 = vpop.eup %4060 }
0x1890   :  { %2947 = vrot.lane.b32.xlu0 %v4061_v24, %s4149_s1  ;;  %v4063_v28 = vpop.eup %4062 }
0x1891   :  { %v2931_v18 = vadd.f32 1.0, %v4063_v28 }
0x1893   :  { %v2932_v7 = vmul.f32 0.5, %v2931_v18 }
0x1895   :  { %v4065_v33 = vpop.eup %4064 }
0x1896   :  { %v2935_v35 = vadd.f32 1.0, %v4065_v33 }
0x1898   :  { %v2936_v36 = vmul.f32 0.5, %v2935_v35 }
0x189a   :  { %v2945_v14 = vmul.f32 %v2943_v37, %v2936_v36 }
0x1902   :  { %v2948_v34 = vpop.permute.xlu0 %2947 }
0x1903   :  { %v2950_v29 = vmul.f32 %v2948_v34, %v2932_v7 }
0x1905   :  { %2952 = vrot.lane.b32.xlu0 %v2950_v29, %s4150_s11 }
0x1977   :  { %v2953_v38 = vpop.permute.xlu0 %2952 }
0x1978   :  { %v2955_v39 = vadd.f32 %v2953_v38, %v2945_v14 }
0x197a   :  { %4066 = vtanh.f32 %v2955_v39 }
0x197b   :  { %4068 = vtanh.f32 %v2938_v48 }
0x1984   :  { %v4067_v44 = vpop.eup %4066 }
0x1985   :  { %2958 = vrot.lane.b32.xlu0 %v4067_v44, %s4149_s1  ;;  %v4069_v53 = vpop.eup %4068 }
0x1986   :  { %v2940_v57 = vadd.f32 1.0, %v4069_v53 }
0x1988   :  { %v2941_v59 = vmul.f32 0.5, %v2940_v57 }
0x19f7   :  { %v2959_v54 = vpop.permute.xlu0 %2958 }
0x19f8   :  { %v2961_v60 = vmul.f32 %v2959_v54, %v2941_v59 }
0x19fa   :  { %v2964_v61 = vrot.slane %v2961_v60, 4  ;;  %3127 = vrot.lane.b32.xlu0 %v2961_v60, %s4150_s11 }
0x19fc   :  { %v2967_v51 = vsel %vm2966_vm3, %v2622_v8, %v2964_v61  ;;  %v3189_v8 = vld [vmem:[#allocation5 + $0xf3] ss:$0 sm:$0xff] }
0x19fd   :  { %2973 = vrot.lane.b32.xlu1 %v2967_v51, %s4150_s11 }
0x1a6c   :  { %v3128_v62 = vpop.permute.xlu0 %3127 }
0x1a6d   :  { %v3130_v63 = vsel %vm171_vm2, %v3128_v62, %v2955_v39 }
0x1a6e   :  { %3132 = vst.msk [vmem:[#allocation7 - $0x2] sm:$0xc0] %vm3131_vm4, %v3130_v63 }
0x1a6f   :  { %v2974_v0 = vpop.permute.xlu1 %2973 }
0x1a70   :  { %3750 = vmatmul.mubr.msk.f32.vlgmr.msra.gmra.mrb[34].mxu0 %vm171_vm2, %v2974_v0 }
0x1b43   :  { %v3043_v4 = vpop.f32.mrb[34].mxu0 }
0x1b44   :  { %v3044_v5 = vadd.f32 %v3187_v2, %v3043_v4  ;;  %v3751_v9 = vpop.f32.mrb[35].mxu0 }
0x1b46   :  { %v3047_v6 = vmax.f32 %v3044_v5, 0.0 }
0x1b48   :  { %3761 = vmatmul.mubr.msk.f32.vlgmr.msra.gmra.mrb[34].mxu1 %vm171_vm2, %v3047_v6 }
0x1c1b   :  { %v3121_v19 = vpop.f32.mrb[34].mxu1 }
0x1c1c   :  { %v3122_v43 = vadd.f32 %v3189_v8, %v3121_v19  ;;  %v3762_v11 = vpop.f32.mrb[35].mxu1 }
0x1c1e   :  { %3126 = vst.msk [vmem:[#allocation7] sm:$0xf] %vm3125_vm5, %v3122_v43 }
0x1c1f   :  { %4125 = shalt.err (!%p4122_p6)
}
0x1c20   :  { %s4126_s18 = scalar_lea.hbm %s4605_s3, 128 }
0x1c21   :  { %p4127_p7 = scmp.ne.s32.totalorder %s4605_s3, %s4126_s18  ;;  %p4130_p8 = scmp.lt.u32.totalorder %s4126_s18, %s4605_s3 }
0x1c23   :  { %p4132_p9 = pnand %p4130_p8, %p4127_p7 }
0x1c25   :  { %4135 = shalt.err (!%p4132_p9)
}
0x1c26   :  { %3142 = dma.vmem_to_hbm [thread:$0]  %s3140_s14, 128, %s4605_s3, [#allocation4]  }
0x1c27   :  { %4140 = dma.done.wait [#allocation4], 128  }
0x1c28   :  { %4141 = vsyncadd [#allocation4], 4294967168 }
0x1c29   :  { %3146 = vsyncpa [#allocation3], 1 }
0x1c2a   :  { %3147 = vsyncpa [#allocation6], 1 }
0x1c2b   :  { %3148 = vsyncpa [#allocation4], 1 }

</bundles_post_ra>
